<compile_context>
chip_gen: v7x
topology: tpu7x:2x2x1
jax: 0.10.0
libtpu: 0.0.40
codegen_flags: <defaults>
</compile_context>

<pallas_src>
import functools
import math

import jax
import jax.numpy as jnp
from jax.experimental import pallas as pl
from jax.experimental.pallas import tpu as pltpu

# ---- static configuration (the torch `params` object) ----------------------
C = 8              # params.residual_channels
N_LAYERS = 4       # params.residual_layers
DIL_CYCLE = 2      # params.dilation_cycle_length
MAX_STEPS = 10     # len(params.noise_schedule)
UNCONDITIONAL = False   # params.unconditional  (False -> condition is added)
B = 2
L = 256

# ---- packed-weight layout ---------------------------------------------------
# One (PACK_ROWS, PACK_COLS) f32 buffer; every row-block start is a multiple
# of 8 so all in-kernel slices are sublane-tile aligned.  Each block stores
# its weight in the leading columns and its bias in the column right after.
PACK_COLS = 25
_R_INPROJ = 0                       # (C, 2)   w cols 0:2,  bias col 2
_R_CEIN = 8                         # (2C, 1)  w col  0,    bias col 1
_R_CEOUT = 24                       # (4C, 2C) w cols 0:16, bias col 16
_R_DCONV = 56                       # per layer (2C, 3C) w cols 0:24, bias col 24
_R_OUTP = 120                       # per layer (2C, C)  w cols 0:8,  bias col 8
_R_SKIP = 184                       # (C, C)   w cols 0:8,  bias col 8
_R_FINAL = 192                      # (C, 1)   w col 0,     bias at (192, 1)
PACK_ROWS = 200


def _silu(x):
    return x * jax.nn.sigmoid(x)


# ---------------------------------------------------------------------------
# Pallas kernel: full SCSE forward for ONE batch element (one grid step).
# ---------------------------------------------------------------------------
def scse_kernel(x2_ref, dstep_ref, w_ref, out_ref):
    dot = functools.partial(jnp.dot, preferred_element_type=jnp.float32)
    Lb = x2_ref.shape[-1]                       # block lane extent (= L)

    x2 = x2_ref[...]                            # (2, Lb): row0=audio row1=cond
    audio = x2[0:1, :]
    cond = x2[1:2, :]

    # --- input_projection: Conv1d(2, C, 1) + ReLU --- K=2 -> VPU FMAs
    w_in = w_ref[_R_INPROJ:_R_INPROJ + C, 0:2]                     # (C, 2)
    b_in = w_ref[_R_INPROJ:_R_INPROJ + C, 2:3]                     # (C, 1)
    x = jnp.maximum(w_in[:, 0:1] * audio + w_in[:, 1:2] * cond + b_in, 0.0)

    # --- ConditionConvBlock: Conv1d(1,2C,1)+ReLU (VPU outer product),
    #     Conv1d(2C,4C,1) (MXU), GLU ---------------------------------------
    ce_in_w = w_ref[_R_CEIN:_R_CEIN + 2 * C, 0:1]
    ce_in_b = w_ref[_R_CEIN:_R_CEIN + 2 * C, 1:2]
    h = jnp.maximum(ce_in_w * cond + ce_in_b, 0.0)                 # (2C, Lb)
    ce_out_w = w_ref[_R_CEOUT:_R_CEOUT + 4 * C, 0:2 * C]
    ce_out_b = w_ref[_R_CEOUT:_R_CEOUT + 4 * C, 2 * C:2 * C + 1]
    z = dot(ce_out_w, h) + ce_out_b                                # (4C, Lb)
    condition = z[:2 * C, :] * jax.nn.sigmoid(z[2 * C:, :])        # GLU (2C, Lb)

    pos = jax.lax.broadcasted_iota(jnp.int32, (C, Lb), 1)          # local position
    inv_sqrt2 = 1.0 / math.sqrt(2.0)

    # --- residual layers (statically unrolled) ------------------------------
    skip = jnp.zeros((C, Lb), jnp.float32)
    for i in range(N_LAYERS):
        dil = 2 ** (i % DIL_CYCLE)
        rd = _R_DCONV + 2 * C * i
        ro = _R_OUTP + 2 * C * i
        dconv_w = w_ref[rd:rd + 2 * C, 0:3 * C]                    # (2C, 3C)
        dconv_b = w_ref[rd:rd + 2 * C, 3 * C:3 * C + 1]
        outp_w = w_ref[ro:ro + 2 * C, 0:C]                         # (2C, C)
        outp_b = w_ref[ro:ro + 2 * C, C:C + 1]

        # diffusion_projection precomputed in glue; lane-broadcast (C,1)->(C,Lb)
        y = x + dstep_ref[i]

        # dilated_conv: Conv1d(C, 2C, 3, padding=dil, dilation=dil) fused into
        # one K=3C matmul.  Shift masks are recomputed per layer (cheap VPU
        # compares) to keep the vreg live-set small.  Roll amounts use the
        # block extent Lb, so shifts never wrap across the batch boundary.
        y_m = jnp.where(pos >= dil, pltpu.roll(y, dil, axis=1), 0.0)       # y[l-dil]
        y_p = jnp.where(pos < Lb - dil, pltpu.roll(y, Lb - dil, axis=1), 0.0)  # y[l+dil]
        # TODO(synk): if the bundle shows VMEM copies for this concat, build
        # y_stack via three aligned sub-writes into a (3C, Lb) VMEM scratch.
        y_stack = jnp.concatenate([y_m, y, y_p], axis=0)           # (3C, Lb)
        yd = dot(dconv_w, y_stack) + dconv_b                       # (2C, Lb)

        if not UNCONDITIONAL:
            # torch computes coff = get_value_from_index(index) but never uses
            # it, so the semantics are simply `y += condition`.
            yd = yd + condition

        ya = jax.nn.sigmoid(yd[:C, :]) * jnp.tanh(yd[C:, :])       # gate*filter

        # TODO(synk): on v5e/v6e (MRF) consider doing this K=8 matmul as VPU
        # sublane-broadcast FMAs to cut one serialized MXU round-trip/layer.
        yo = dot(outp_w, ya) + outp_b                              # (2C, Lb)
        x = (x + yo[:C, :]) * inv_sqrt2
        skip = skip + yo[C:, :]

    # --- skip / output projections ------------------------------------------
    skip_w = w_ref[_R_SKIP:_R_SKIP + C, 0:C]
    skip_b = w_ref[_R_SKIP:_R_SKIP + C, C:C + 1]
    xo = skip * (1.0 / math.sqrt(N_LAYERS))
    xo = jnp.maximum(dot(skip_w, xo) + skip_b, 0.0)                # (C, Lb)
    # final Conv1d(C, 1, 1): M=1 matmul -> weighted sublane reduce (VPU/XLU)
    final_w = w_ref[_R_FINAL:_R_FINAL + C, 0:1]                    # (C, 1)
    final_b = w_ref[_R_FINAL:_R_FINAL + 1, 1:2]                    # (1, 1)
    out_ref[...] = jnp.sum(final_w * xo, axis=0, keepdims=True) + final_b


# ---------------------------------------------------------------------------
# Wrapper: pack weights, precompute dstep, one pallas_call over grid=(B,).
# ---------------------------------------------------------------------------
def _pack_weights(p):
    # fuse the 3 conv taps: (layer, tap, 2C, C) -> (layer, 2C, 3C), K = tap*C+in
    dconv_wf = jnp.transpose(p["dconv_w"], (0, 2, 1, 3)).reshape(
        N_LAYERS, 2 * C, 3 * C)
    w = jnp.zeros((PACK_ROWS, PACK_COLS), jnp.float32)
    w = w.at[_R_INPROJ:_R_INPROJ + C, 0:2].set(p["inproj_w"])
    w = w.at[_R_INPROJ:_R_INPROJ + C, 2:3].set(p["inproj_b"])
    w = w.at[_R_CEIN:_R_CEIN + 2 * C, 0:1].set(p["ce_in_w"])
    w = w.at[_R_CEIN:_R_CEIN + 2 * C, 1:2].set(p["ce_in_b"])
    w = w.at[_R_CEOUT:_R_CEOUT + 4 * C, 0:2 * C].set(p["ce_out_w"])
    w = w.at[_R_CEOUT:_R_CEOUT + 4 * C, 2 * C:2 * C + 1].set(p["ce_out_b"])
    for i in range(N_LAYERS):
        rd = _R_DCONV + 2 * C * i
        ro = _R_OUTP + 2 * C * i
        w = w.at[rd:rd + 2 * C, 0:3 * C].set(dconv_wf[i])
        w = w.at[rd:rd + 2 * C, 3 * C:3 * C + 1].set(p["dconv_b"][i])
        w = w.at[ro:ro + 2 * C, 0:C].set(p["outp_w"][i])
        w = w.at[ro:ro + 2 * C, C:C + 1].set(p["outp_b"][i])
    w = w.at[_R_SKIP:_R_SKIP + C, 0:C].set(p["skip_w"])
    w = w.at[_R_SKIP:_R_SKIP + C, C:C + 1].set(p["skip_b"])
    w = w.at[_R_FINAL:_R_FINAL + C, 0:1].set(p["final_w"].reshape(C, 1))
    w = w.at[_R_FINAL:_R_FINAL + 1, 1:2].set(p["final_b"])
    return w


@jax.jit
def scse_forward(audio, diffusion_step, condition, params):
    # DiffusionEmbedding (integer-step path) + per-layer diffusion_projection,
    # hoisted out of the kernel (N=1 matmuls are terrible MXU fill).
    # TODO(synk): the float-step lerp-embedding path of DiffusionEmbedding is
    # not implemented; integer diffusion steps only.
    d = params["emb_table"][diffusion_step].astype(jnp.float32)        # (B, 128)
    d = _silu(d @ params["p1_w"].T + params["p1_b"][:, 0])             # (B, 512)
    d = _silu(d @ params["p2_w"].T + params["p2_b"][:, 0])             # (B, 512)
    dstep = (jnp.einsum("bf,lcf->blc", d, params["diffp_w"])
             + params["diffp_b"][None, :, :, 0])                       # (B, NL, C)
    dstep = dstep[..., None].astype(jnp.float32)                       # (B, NL, C, 1)

    # torch.cat([audio.unsqueeze(1), condition.unsqueeze(1)], dim=1) -> (B,2,L)
    x2 = jnp.stack([audio, condition], axis=1).astype(jnp.float32)

    wpack = _pack_weights(params)       # one ~20 KiB DMA instead of 16 tiny ones
    bsz, _, seq = x2.shape

    out = pl.pallas_call(
        scse_kernel,
        out_shape=jax.ShapeDtypeStruct((bsz, 1, seq), jnp.float32),
        grid_spec=pltpu.PrefetchScalarGridSpec(
            num_scalar_prefetch=0,
            # One grid step per batch element: dual-TC on v7x ("parallel"),
            # a single extra ~0.35us serial step on v5e/v6e.
            grid=(bsz,),
            in_specs=[
                pl.BlockSpec((None, 2, seq), lambda b: (b, 0, 0)),
                pl.BlockSpec((None, N_LAYERS, C, 1), lambda b: (b, 0, 0, 0)),
                pl.BlockSpec((PACK_ROWS, PACK_COLS), lambda b: (0, 0)),
            ],
            out_specs=pl.BlockSpec((None, 1, seq), lambda b: (b, 0, 0)),
        ),
        compiler_params=pltpu.CompilerParams(
            dimension_semantics=("parallel",)),
    )(x2, dstep, wpack)

    return out                                                         # (B, 1, L)


# ---------------------------------------------------------------------------
# Deterministic parameter construction (shapes from the module __init__).
# ---------------------------------------------------------------------------
def build_embedding_table(max_steps):
    steps = jnp.arange(max_steps, dtype=jnp.float32)[:, None]
    dims = jnp.arange(64, dtype=jnp.float32)[None, :]
    table = steps * 10.0 ** (dims * 4.0 / 63.0)
    return jnp.concatenate([jnp.sin(table), jnp.cos(table)], axis=1)   # (max_steps, 128)


def init_params(key):
    ks = iter(jax.random.split(key, 24))
    p = {}

    def kaiming(shape, fan_in):
        return jax.random.normal(next(ks), shape, jnp.float32) * math.sqrt(2.0 / fan_in)

    def unif(shape, fan_in):
        b = 1.0 / math.sqrt(fan_in)
        return jax.random.uniform(next(ks), shape, jnp.float32, -b, b)

    # SCSE.input_projection : Conv1d(2, C, 1)
    p["inproj_w"] = kaiming((C, 2), 2)
    p["inproj_b"] = unif((C, 1), 2)
    # DiffusionEmbedding.projection1/2 : Linear(128,512), Linear(512,512)
    p["p1_w"] = unif((512, 128), 128); p["p1_b"] = unif((512, 1), 128)
    p["p2_w"] = unif((512, 512), 512); p["p2_b"] = unif((512, 1), 512)
    # ConditionConvBlock : Conv1d(1,2C,1), Conv1d(2C,4C,1)
    p["ce_in_w"] = kaiming((2 * C, 1), 1);          p["ce_in_b"] = unif((2 * C, 1), 1)
    p["ce_out_w"] = kaiming((4 * C, 2 * C), 2 * C); p["ce_out_b"] = unif((4 * C, 1), 2 * C)
    # ResidualBlocks (stacked over layers); dconv weight stored as (layer, tap, out, in)
    p["dconv_w"] = kaiming((N_LAYERS, 3, 2 * C, C), C * 3)
    p["dconv_b"] = unif((N_LAYERS, 2 * C, 1), C * 3)
    p["diffp_w"] = unif((N_LAYERS, C, 512), 512)
    p["diffp_b"] = unif((N_LAYERS, C, 1), 512)
    p["outp_w"] = kaiming((N_LAYERS, 2 * C, C), C)
    p["outp_b"] = unif((N_LAYERS, 2 * C, 1), C)
    # SCSE.skip_projection / output_projection
    p["skip_w"] = kaiming((C, C), C); p["skip_b"] = unif((C, 1), C)
    # NOTE: torch zero-inits output_projection.weight; we use small random
    # values so the end-to-end numerical check actually exercises the path.
    p["final_w"] = kaiming((1, C), C)
    p["final_b"] = unif((1, 1), C)
    p["emb_table"] = build_embedding_table(MAX_STEPS)
    return p


# ---------------------------------------------------------------------------
# Pure-JAX reference (mirrors the torch forward, HIGHEST precision ground truth).
# ---------------------------------------------------------------------------
def reference_forward(audio, diffusion_step, condition, p):
    hi = jax.lax.Precision.HIGHEST
    ein = functools.partial(jnp.einsum, precision=hi)
    x2 = jnp.stack([audio, condition], axis=1)                            # (B,2,L)
    x = jax.nn.relu(ein("oi,bil->bol", p["inproj_w"], x2) + p["inproj_b"][None])
    d = p["emb_table"][diffusion_step]                                    # (B,128)
    d = _silu(ein("bi,oi->bo", d, p["p1_w"]) + p["p1_b"][:, 0])
    d = _silu(ein("bi,oi->bo", d, p["p2_w"]) + p["p2_b"][:, 0])
    c1 = condition[:, None, :]                                            # (B,1,L)
    h = jax.nn.relu(ein("oi,bil->bol", p["ce_in_w"], c1) + p["ce_in_b"][None])
    z = ein("oi,bil->bol", p["ce_out_w"], h) + p["ce_out_b"][None]
    cond_e = z[:, :2 * C] * jax.nn.sigmoid(z[:, 2 * C:])
    skip = None
    for i in range(N_LAYERS):
        dil = 2 ** (i % DIL_CYCLE)
        dstep = ein("bi,oi->bo", d, p["diffp_w"][i]) + p["diffp_b"][i, :, 0]
        y = x + dstep[:, :, None]
        w = jnp.transpose(p["dconv_w"][i], (1, 2, 0))                     # (2C,C,3)
        y = jax.lax.conv_general_dilated(
            y, w, window_strides=(1,), padding=[(dil, dil)],
            rhs_dilation=(dil,), dimension_numbers=("NCH", "OIH", "NCH"),
            precision=hi) + p["dconv_b"][i][None]
        if not UNCONDITIONAL:
            y = y + cond_e
        y = jax.nn.sigmoid(y[:, :C]) * jnp.tanh(y[:, C:])
        y = ein("oi,bil->bol", p["outp_w"][i], y) + p["outp_b"][i][None]
        residual, sk = y[:, :C], y[:, C:]
        x = (x + residual) / math.sqrt(2.0)
        skip = sk if skip is None else sk + skip
    x = skip / math.sqrt(N_LAYERS)
    x = jax.nn.relu(ein("oi,bil->bol", p["skip_w"], x) + p["skip_b"][None])
    x = ein("oi,bil->bol", p["final_w"], x) + p["final_b"][None]
    return x


if __name__ == "__main__":
    key = jax.random.PRNGKey(0)
    kp, ka, kc = jax.random.split(key, 3)
    params = init_params(kp)
    audio = jax.random.normal(ka, (B, L), jnp.float32)
    condition = jax.random.normal(kc, (B, L), jnp.float32)
    diffusion_step = jnp.array([3, 7], dtype=jnp.int32)

    out = scse_forward(audio, diffusion_step, condition, params)
    out = jax.block_until_ready(out)
    assert out.shape == (B, 1, L), out.shape

    ref = reference_forward(audio, diffusion_step, condition, params)
    # Kernel matmuls run at default TPU precision (bf16 passes, f32 accumulate)
    # per the perf review; the reference is f32 HIGHEST, so allow a looser bound.
    if not jnp.allclose(out, ref, rtol=5e-2, atol=5e-2):
        raise AssertionError(
            f"mismatch vs reference, max abs err = {jnp.max(jnp.abs(out - ref))}")

    print("KERNEL_OK")
</pallas_src>

<mosaic_0001>
module attributes {stable_mosaic.version = 11 : i64} {
  func.func @scse_kernel(%arg0: i32, %arg1: memref<1x2x256xf32, #tpu.memory_space<vmem>>, %arg2: memref<1x4x8x1xf32, #tpu.memory_space<vmem>>, %arg3: memref<200x25xf32, #tpu.memory_space<vmem>>, %arg4: memref<1x1x256xf32, #tpu.memory_space<vmem>>) attributes {dimension_semantics = [#tpu.dimension_semantics<parallel>], iteration_bounds = array<i64: 2>, scalar_prefetch = 0 : i64, scratch_operands = 0 : i64, tpu.core_type = #tpu.core_type<tc>, window_params = [{transform_indices = @transform_0, window_bounds = array<i64: 1, 2, 256>}, {transform_indices = @transform_1, window_bounds = array<i64: 1, 4, 8, 1>}, {pipeline_mode = #tpu.pipeline_mode<synchronous>, transform_indices = @transform_2, window_bounds = array<i64: 200, 25>}, {transform_indices = @transform_3, window_bounds = array<i64: 1, 1, 256>}]} {
    %c0 = arith.constant 0 : index
    %c0_0 = arith.constant 0 : index
    %c0_1 = arith.constant 0 : index
    %0 = vector.load %arg1[%c0, %c0_0, %c0_1] : memref<1x2x256xf32, #tpu.memory_space<vmem>>, vector<1x2x256xf32>
    %1 = vector.shape_cast %0 : vector<1x2x256xf32> to vector<2x256xf32>
    %2 = vector.extract_strided_slice %1 {offsets = [0, 0], sizes = [1, 256], strides = [1, 1]} : vector<2x256xf32> to vector<1x256xf32>
    %3 = vector.extract_strided_slice %1 {offsets = [1, 0], sizes = [1, 256], strides = [1, 1]} : vector<2x256xf32> to vector<1x256xf32>
    %c0_2 = arith.constant 0 : index
    %c0_3 = arith.constant 0 : index
    %4 = vector.load %arg3[%c0_2, %c0_3] : memref<200x25xf32, #tpu.memory_space<vmem>>, vector<8x2xf32>
    %c0_4 = arith.constant 0 : index
    %c2 = arith.constant 2 : index
    %5 = vector.load %arg3[%c0_4, %c2] : memref<200x25xf32, #tpu.memory_space<vmem>>, vector<8x1xf32>
    %6 = vector.extract_strided_slice %4 {offsets = [0, 0], sizes = [8, 1], strides = [1, 1]} : vector<8x2xf32> to vector<8x1xf32>
    %7 = vector.broadcast %6 : vector<8x1xf32> to vector<8x256xf32>
    %8 = vector.broadcast %2 : vector<1x256xf32> to vector<8x256xf32>
    %9 = arith.mulf %7, %8 : vector<8x256xf32>
    %10 = vector.extract_strided_slice %4 {offsets = [0, 1], sizes = [8, 1], strides = [1, 1]} : vector<8x2xf32> to vector<8x1xf32>
    %11 = vector.broadcast %10 : vector<8x1xf32> to vector<8x256xf32>
    %12 = vector.broadcast %3 : vector<1x256xf32> to vector<8x256xf32>
    %13 = arith.mulf %11, %12 : vector<8x256xf32>
    %14 = arith.addf %9, %13 : vector<8x256xf32>
    %15 = vector.broadcast %5 : vector<8x1xf32> to vector<8x256xf32>
    %16 = arith.addf %14, %15 : vector<8x256xf32>
    %cst = arith.constant 0.000000e+00 : f32
    %17 = vector.broadcast %cst : f32 to vector<8x256xf32>
    %18 = arith.maximumf %16, %17 : vector<8x256xf32>
    %c8 = arith.constant 8 : index
    %c0_5 = arith.constant 0 : index
    %19 = vector.load %arg3[%c8, %c0_5] : memref<200x25xf32, #tpu.memory_space<vmem>>, vector<16x1xf32>
    %c8_6 = arith.constant 8 : index
    %c1 = arith.constant 1 : index
    %20 = vector.load %arg3[%c8_6, %c1] : memref<200x25xf32, #tpu.memory_space<vmem>>, vector<16x1xf32>
    %21 = vector.broadcast %19 : vector<16x1xf32> to vector<16x256xf32>
    %22 = vector.broadcast %3 : vector<1x256xf32> to vector<16x256xf32>
    %23 = arith.mulf %21, %22 : vector<16x256xf32>
    %24 = vector.broadcast %20 : vector<16x1xf32> to vector<16x256xf32>
    %25 = arith.addf %23, %24 : vector<16x256xf32>
    %cst_7 = arith.constant 0.000000e+00 : f32
    %26 = vector.broadcast %cst_7 : f32 to vector<16x256xf32>
    %27 = arith.maximumf %25, %26 : vector<16x256xf32>
    %c24 = arith.constant 24 : index
    %c0_8 = arith.constant 0 : index
    %28 = vector.load %arg3[%c24, %c0_8] : memref<200x25xf32, #tpu.memory_space<vmem>>, vector<32x16xf32>
    %c24_9 = arith.constant 24 : index
    %c16 = arith.constant 16 : index
    %29 = vector.load %arg3[%c24_9, %c16] : memref<200x25xf32, #tpu.memory_space<vmem>>, vector<32x1xf32>
    %cst_10 = arith.constant dense<0.000000e+00> : vector<32x256xf32>
    %30 = tpu.matmul %28, %27, %cst_10 {dimension_numbers = #tpu.dot_dimension_numbers<[1], [0], [0], [1], [0, 0, 1, 1], [], []>} : vector<32x16xf32>, vector<16x256xf32>, vector<32x256xf32> -> vector<32x256xf32>
    %31 = vector.broadcast %29 : vector<32x1xf32> to vector<32x256xf32>
    %32 = arith.addf %30, %31 : vector<32x256xf32>
    %33 = vector.extract_strided_slice %32 {offsets = [0, 0], sizes = [16, 256], strides = [1, 1]} : vector<32x256xf32> to vector<16x256xf32>
    %34 = vector.extract_strided_slice %32 {offsets = [16, 0], sizes = [16, 256], strides = [1, 1]} : vector<32x256xf32> to vector<16x256xf32>
    %35 = arith.negf %34 : vector<16x256xf32>
    %36 = math.exp %35 : vector<16x256xf32>
    %cst_11 = arith.constant 1.000000e+00 : f32
    %37 = vector.broadcast %cst_11 : f32 to vector<16x256xf32>
    %38 = arith.addf %37, %36 : vector<16x256xf32>
    %39 = arith.divf %37, %38 : vector<16x256xf32>
    %40 = arith.mulf %33, %39 : vector<16x256xf32>
    %41 = tpu.iota {dimensions = array<i32: 1>} : vector<8x256xi32>
    %cst_12 = arith.constant 0.000000e+00 : f32
    %42 = vector.broadcast %cst_12 : f32 to vector<8x256xf32>
    %c56 = arith.constant 56 : index
    %c0_13 = arith.constant 0 : index
    %43 = vector.load %arg3[%c56, %c0_13] : memref<200x25xf32, #tpu.memory_space<vmem>>, vector<16x24xf32>
    %c56_14 = arith.constant 56 : index
    %c24_15 = arith.constant 24 : index
    %44 = vector.load %arg3[%c56_14, %c24_15] : memref<200x25xf32, #tpu.memory_space<vmem>>, vector<16x1xf32>
    %c120 = arith.constant 120 : index
    %c0_16 = arith.constant 0 : index
    %45 = vector.load %arg3[%c120, %c0_16] : memref<200x25xf32, #tpu.memory_space<vmem>>, vector<16x8xf32>
    %c120_17 = arith.constant 120 : index
    %c8_18 = arith.constant 8 : index
    %46 = vector.load %arg3[%c120_17, %c8_18] : memref<200x25xf32, #tpu.memory_space<vmem>>, vector<16x1xf32>
    %c0_19 = arith.constant 0 : index
    %c0_20 = arith.constant 0 : index
    %c0_21 = arith.constant 0 : index
    %c0_22 = arith.constant 0 : index
    %47 = vector.load %arg2[%c0_19, %c0_20, %c0_21, %c0_22] : memref<1x4x8x1xf32, #tpu.memory_space<vmem>>, vector<1x1x8x1xf32>
    %48 = vector.shape_cast %47 : vector<1x1x8x1xf32> to vector<8x1xf32>
    %49 = vector.broadcast %48 : vector<8x1xf32> to vector<8x256xf32>
    %50 = arith.addf %18, %49 : vector<8x256xf32>
    %c1_i32 = arith.constant 1 : i32
    %51 = vector.broadcast %c1_i32 : i32 to vector<8x256xi32>
    %52 = arith.cmpi sge, %41, %51 : vector<8x256xi32>
    %c1_i32_23 = arith.constant 1 : i32
    %53 = tpu.dynamic_rotate %50 by %c1_i32_23 dim 1 : vector<8x256xf32>, i32 -> vector<8x256xf32>
    %cst_24 = arith.constant 0.000000e+00 : f32
    %54 = vector.broadcast %cst_24 : f32 to vector<8x256xf32>
    %55 = arith.select %52, %53, %54 : vector<8x256xi1>, vector<8x256xf32>
    %c255_i32 = arith.constant 255 : i32
    %56 = vector.broadcast %c255_i32 : i32 to vector<8x256xi32>
    %57 = arith.cmpi slt, %41, %56 : vector<8x256xi32>
    %c255_i32_25 = arith.constant 255 : i32
    %58 = tpu.dynamic_rotate %50 by %c255_i32_25 dim 1 : vector<8x256xf32>, i32 -> vector<8x256xf32>
    %cst_26 = arith.constant 0.000000e+00 : f32
    %59 = vector.broadcast %cst_26 : f32 to vector<8x256xf32>
    %60 = arith.select %57, %58, %59 : vector<8x256xi1>, vector<8x256xf32>
    %61 = tpu.concatenate %55, %50, %60 in 0 : vector<8x256xf32>, vector<8x256xf32>, vector<8x256xf32> -> vector<24x256xf32>
    %cst_27 = arith.constant dense<0.000000e+00> : vector<16x256xf32>
    %62 = tpu.matmul %43, %61, %cst_27 {dimension_numbers = #tpu.dot_dimension_numbers<[1], [0], [0], [1], [0, 0, 1, 1], [], []>} : vector<16x24xf32>, vector<24x256xf32>, vector<16x256xf32> -> vector<16x256xf32>
    %63 = vector.broadcast %44 : vector<16x1xf32> to vector<16x256xf32>
    %64 = arith.addf %62, %63 : vector<16x256xf32>
    %65 = arith.addf %64, %40 : vector<16x256xf32>
    %66 = vector.extract_strided_slice %65 {offsets = [0, 0], sizes = [8, 256], strides = [1, 1]} : vector<16x256xf32> to vector<8x256xf32>
    %67 = arith.negf %66 : vector<8x256xf32>
    %68 = math.exp %67 : vector<8x256xf32>
    %cst_28 = arith.constant 1.000000e+00 : f32
    %69 = vector.broadcast %cst_28 : f32 to vector<8x256xf32>
    %70 = arith.addf %69, %68 : vector<8x256xf32>
    %71 = arith.divf %69, %70 : vector<8x256xf32>
    %72 = vector.extract_strided_slice %65 {offsets = [8, 0], sizes = [8, 256], strides = [1, 1]} : vector<16x256xf32> to vector<8x256xf32>
    %73 = math.tanh %72 : vector<8x256xf32>
    %74 = arith.mulf %71, %73 : vector<8x256xf32>
    %cst_29 = arith.constant dense<0.000000e+00> : vector<16x256xf32>
    %75 = tpu.matmul %45, %74, %cst_29 {dimension_numbers = #tpu.dot_dimension_numbers<[1], [0], [0], [1], [0, 0, 1, 1], [], []>} : vector<16x8xf32>, vector<8x256xf32>, vector<16x256xf32> -> vector<16x256xf32>
    %76 = vector.broadcast %46 : vector<16x1xf32> to vector<16x256xf32>
    %77 = arith.addf %75, %76 : vector<16x256xf32>
    %78 = vector.extract_strided_slice %77 {offsets = [0, 0], sizes = [8, 256], strides = [1, 1]} : vector<16x256xf32> to vector<8x256xf32>
    %79 = arith.addf %18, %78 : vector<8x256xf32>
    %cst_30 = arith.constant 0.707106769 : f32
    %80 = vector.broadcast %cst_30 : f32 to vector<8x256xf32>
    %81 = arith.mulf %79, %80 : vector<8x256xf32>
    %82 = vector.extract_strided_slice %77 {offsets = [8, 0], sizes = [8, 256], strides = [1, 1]} : vector<16x256xf32> to vector<8x256xf32>
    %83 = arith.addf %42, %82 : vector<8x256xf32>
    %c72 = arith.constant 72 : index
    %c0_31 = arith.constant 0 : index
    %84 = vector.load %arg3[%c72, %c0_31] : memref<200x25xf32, #tpu.memory_space<vmem>>, vector<16x24xf32>
    %c72_32 = arith.constant 72 : index
    %c24_33 = arith.constant 24 : index
    %85 = vector.load %arg3[%c72_32, %c24_33] : memref<200x25xf32, #tpu.memory_space<vmem>>, vector<16x1xf32>
    %c136 = arith.constant 136 : index
    %c0_34 = arith.constant 0 : index
    %86 = vector.load %arg3[%c136, %c0_34] : memref<200x25xf32, #tpu.memory_space<vmem>>, vector<16x8xf32>
    %c136_35 = arith.constant 136 : index
    %c8_36 = arith.constant 8 : index
    %87 = vector.load %arg3[%c136_35, %c8_36] : memref<200x25xf32, #tpu.memory_space<vmem>>, vector<16x1xf32>
    %c0_37 = arith.constant 0 : index
    %c1_38 = arith.constant 1 : index
    %c0_39 = arith.constant 0 : index
    %c0_40 = arith.constant 0 : index
    %88 = vector.load %arg2[%c0_37, %c1_38, %c0_39, %c0_40] : memref<1x4x8x1xf32, #tpu.memory_space<vmem>>, vector<1x1x8x1xf32>
    %89 = vector.shape_cast %88 : vector<1x1x8x1xf32> to vector<8x1xf32>
    %90 = vector.broadcast %89 : vector<8x1xf32> to vector<8x256xf32>
    %91 = arith.addf %81, %90 : vector<8x256xf32>
    %c2_i32 = arith.constant 2 : i32
    %92 = vector.broadcast %c2_i32 : i32 to vector<8x256xi32>
    %93 = arith.cmpi sge, %41, %92 : vector<8x256xi32>
    %c2_i32_41 = arith.constant 2 : i32
    %94 = tpu.dynamic_rotate %91 by %c2_i32_41 dim 1 : vector<8x256xf32>, i32 -> vector<8x256xf32>
    %cst_42 = arith.constant 0.000000e+00 : f32
    %95 = vector.broadcast %cst_42 : f32 to vector<8x256xf32>
    %96 = arith.select %93, %94, %95 : vector<8x256xi1>, vector<8x256xf32>
    %c254_i32 = arith.constant 254 : i32
    %97 = vector.broadcast %c254_i32 : i32 to vector<8x256xi32>
    %98 = arith.cmpi slt, %41, %97 : vector<8x256xi32>
    %c254_i32_43 = arith.constant 254 : i32
    %99 = tpu.dynamic_rotate %91 by %c254_i32_43 dim 1 : vector<8x256xf32>, i32 -> vector<8x256xf32>
    %cst_44 = arith.constant 0.000000e+00 : f32
    %100 = vector.broadcast %cst_44 : f32 to vector<8x256xf32>
    %101 = arith.select %98, %99, %100 : vector<8x256xi1>, vector<8x256xf32>
    %102 = tpu.concatenate %96, %91, %101 in 0 : vector<8x256xf32>, vector<8x256xf32>, vector<8x256xf32> -> vector<24x256xf32>
    %cst_45 = arith.constant dense<0.000000e+00> : vector<16x256xf32>
    %103 = tpu.matmul %84, %102, %cst_45 {dimension_numbers = #tpu.dot_dimension_numbers<[1], [0], [0], [1], [0, 0, 1, 1], [], []>} : vector<16x24xf32>, vector<24x256xf32>, vector<16x256xf32> -> vector<16x256xf32>
    %104 = vector.broadcast %85 : vector<16x1xf32> to vector<16x256xf32>
    %105 = arith.addf %103, %104 : vector<16x256xf32>
    %106 = arith.addf %105, %40 : vector<16x256xf32>
    %107 = vector.extract_strided_slice %106 {offsets = [0, 0], sizes = [8, 256], strides = [1, 1]} : vector<16x256xf32> to vector<8x256xf32>
    %108 = arith.negf %107 : vector<8x256xf32>
    %109 = math.exp %108 : vector<8x256xf32>
    %cst_46 = arith.constant 1.000000e+00 : f32
    %110 = vector.broadcast %cst_46 : f32 to vector<8x256xf32>
    %111 = arith.addf %110, %109 : vector<8x256xf32>
    %112 = arith.divf %110, %111 : vector<8x256xf32>
    %113 = vector.extract_strided_slice %106 {offsets = [8, 0], sizes = [8, 256], strides = [1, 1]} : vector<16x256xf32> to vector<8x256xf32>
    %114 = math.tanh %113 : vector<8x256xf32>
    %115 = arith.mulf %112, %114 : vector<8x256xf32>
    %cst_47 = arith.constant dense<0.000000e+00> : vector<16x256xf32>
    %116 = tpu.matmul %86, %115, %cst_47 {dimension_numbers = #tpu.dot_dimension_numbers<[1], [0], [0], [1], [0, 0, 1, 1], [], []>} : vector<16x8xf32>, vector<8x256xf32>, vector<16x256xf32> -> vector<16x256xf32>
    %117 = vector.broadcast %87 : vector<16x1xf32> to vector<16x256xf32>
    %118 = arith.addf %116, %117 : vector<16x256xf32>
    %119 = vector.extract_strided_slice %118 {offsets = [0, 0], sizes = [8, 256], strides = [1, 1]} : vector<16x256xf32> to vector<8x256xf32>
    %120 = arith.addf %81, %119 : vector<8x256xf32>
    %cst_48 = arith.constant 0.707106769 : f32
    %121 = vector.broadcast %cst_48 : f32 to vector<8x256xf32>
    %122 = arith.mulf %120, %121 : vector<8x256xf32>
    %123 = vector.extract_strided_slice %118 {offsets = [8, 0], sizes = [8, 256], strides = [1, 1]} : vector<16x256xf32> to vector<8x256xf32>
    %124 = arith.addf %83, %123 : vector<8x256xf32>
    %c88 = arith.constant 88 : index
    %c0_49 = arith.constant 0 : index
    %125 = vector.load %arg3[%c88, %c0_49] : memref<200x25xf32, #tpu.memory_space<vmem>>, vector<16x24xf32>
    %c88_50 = arith.constant 88 : index
    %c24_51 = arith.constant 24 : index
    %126 = vector.load %arg3[%c88_50, %c24_51] : memref<200x25xf32, #tpu.memory_space<vmem>>, vector<16x1xf32>
    %c152 = arith.constant 152 : index
    %c0_52 = arith.constant 0 : index
    %127 = vector.load %arg3[%c152, %c0_52] : memref<200x25xf32, #tpu.memory_space<vmem>>, vector<16x8xf32>
    %c152_53 = arith.constant 152 : index
    %c8_54 = arith.constant 8 : index
    %128 = vector.load %arg3[%c152_53, %c8_54] : memref<200x25xf32, #tpu.memory_space<vmem>>, vector<16x1xf32>
    %c0_55 = arith.constant 0 : index
    %c2_56 = arith.constant 2 : index
    %c0_57 = arith.constant 0 : index
    %c0_58 = arith.constant 0 : index
    %129 = vector.load %arg2[%c0_55, %c2_56, %c0_57, %c0_58] : memref<1x4x8x1xf32, #tpu.memory_space<vmem>>, vector<1x1x8x1xf32>
    %130 = vector.shape_cast %129 : vector<1x1x8x1xf32> to vector<8x1xf32>
    %131 = vector.broadcast %130 : vector<8x1xf32> to vector<8x256xf32>
    %132 = arith.addf %122, %131 : vector<8x256xf32>
    %c1_i32_59 = arith.constant 1 : i32
    %133 = vector.broadcast %c1_i32_59 : i32 to vector<8x256xi32>
    %134 = arith.cmpi sge, %41, %133 : vector<8x256xi32>
    %c1_i32_60 = arith.constant 1 : i32
    %135 = tpu.dynamic_rotate %132 by %c1_i32_60 dim 1 : vector<8x256xf32>, i32 -> vector<8x256xf32>
    %cst_61 = arith.constant 0.000000e+00 : f32
    %136 = vector.broadcast %cst_61 : f32 to vector<8x256xf32>
    %137 = arith.select %134, %135, %136 : vector<8x256xi1>, vector<8x256xf32>
    %c255_i32_62 = arith.constant 255 : i32
    %138 = vector.broadcast %c255_i32_62 : i32 to vector<8x256xi32>
    %139 = arith.cmpi slt, %41, %138 : vector<8x256xi32>
    %c255_i32_63 = arith.constant 255 : i32
    %140 = tpu.dynamic_rotate %132 by %c255_i32_63 dim 1 : vector<8x256xf32>, i32 -> vector<8x256xf32>
    %cst_64 = arith.constant 0.000000e+00 : f32
    %141 = vector.broadcast %cst_64 : f32 to vector<8x256xf32>
    %142 = arith.select %139, %140, %141 : vector<8x256xi1>, vector<8x256xf32>
    %143 = tpu.concatenate %137, %132, %142 in 0 : vector<8x256xf32>, vector<8x256xf32>, vector<8x256xf32> -> vector<24x256xf32>
    %cst_65 = arith.constant dense<0.000000e+00> : vector<16x256xf32>
    %144 = tpu.matmul %125, %143, %cst_65 {dimension_numbers = #tpu.dot_dimension_numbers<[1], [0], [0], [1], [0, 0, 1, 1], [], []>} : vector<16x24xf32>, vector<24x256xf32>, vector<16x256xf32> -> vector<16x256xf32>
    %145 = vector.broadcast %126 : vector<16x1xf32> to vector<16x256xf32>
    %146 = arith.addf %144, %145 : vector<16x256xf32>
    %147 = arith.addf %146, %40 : vector<16x256xf32>
    %148 = vector.extract_strided_slice %147 {offsets = [0, 0], sizes = [8, 256], strides = [1, 1]} : vector<16x256xf32> to vector<8x256xf32>
    %149 = arith.negf %148 : vector<8x256xf32>
    %150 = math.exp %149 : vector<8x256xf32>
    %cst_66 = arith.constant 1.000000e+00 : f32
    %151 = vector.broadcast %cst_66 : f32 to vector<8x256xf32>
    %152 = arith.addf %151, %150 : vector<8x256xf32>
    %153 = arith.divf %151, %152 : vector<8x256xf32>
    %154 = vector.extract_strided_slice %147 {offsets = [8, 0], sizes = [8, 256], strides = [1, 1]} : vector<16x256xf32> to vector<8x256xf32>
    %155 = math.tanh %154 : vector<8x256xf32>
    %156 = arith.mulf %153, %155 : vector<8x256xf32>
    %cst_67 = arith.constant dense<0.000000e+00> : vector<16x256xf32>
    %157 = tpu.matmul %127, %156, %cst_67 {dimension_numbers = #tpu.dot_dimension_numbers<[1], [0], [0], [1], [0, 0, 1, 1], [], []>} : vector<16x8xf32>, vector<8x256xf32>, vector<16x256xf32> -> vector<16x256xf32>
    %158 = vector.broadcast %128 : vector<16x1xf32> to vector<16x256xf32>
    %159 = arith.addf %157, %158 : vector<16x256xf32>
    %160 = vector.extract_strided_slice %159 {offsets = [0, 0], sizes = [8, 256], strides = [1, 1]} : vector<16x256xf32> to vector<8x256xf32>
    %161 = arith.addf %122, %160 : vector<8x256xf32>
    %cst_68 = arith.constant 0.707106769 : f32
    %162 = vector.broadcast %cst_68 : f32 to vector<8x256xf32>
    %163 = arith.mulf %161, %162 : vector<8x256xf32>
    %164 = vector.extract_strided_slice %159 {offsets = [8, 0], sizes = [8, 256], strides = [1, 1]} : vector<16x256xf32> to vector<8x256xf32>
    %165 = arith.addf %124, %164 : vector<8x256xf32>
    %c104 = arith.constant 104 : index
    %c0_69 = arith.constant 0 : index
    %166 = vector.load %arg3[%c104, %c0_69] : memref<200x25xf32, #tpu.memory_space<vmem>>, vector<16x24xf32>
    %c104_70 = arith.constant 104 : index
    %c24_71 = arith.constant 24 : index
    %167 = vector.load %arg3[%c104_70, %c24_71] : memref<200x25xf32, #tpu.memory_space<vmem>>, vector<16x1xf32>
    %c168 = arith.constant 168 : index
    %c0_72 = arith.constant 0 : index
    %168 = vector.load %arg3[%c168, %c0_72] : memref<200x25xf32, #tpu.memory_space<vmem>>, vector<16x8xf32>
    %c168_73 = arith.constant 168 : index
    %c8_74 = arith.constant 8 : index
    %169 = vector.load %arg3[%c168_73, %c8_74] : memref<200x25xf32, #tpu.memory_space<vmem>>, vector<16x1xf32>
    %c0_75 = arith.constant 0 : index
    %c3 = arith.constant 3 : index
    %c0_76 = arith.constant 0 : index
    %c0_77 = arith.constant 0 : index
    %170 = vector.load %arg2[%c0_75, %c3, %c0_76, %c0_77] : memref<1x4x8x1xf32, #tpu.memory_space<vmem>>, vector<1x1x8x1xf32>
    %171 = vector.shape_cast %170 : vector<1x1x8x1xf32> to vector<8x1xf32>
    %172 = vector.broadcast %171 : vector<8x1xf32> to vector<8x256xf32>
    %173 = arith.addf %163, %172 : vector<8x256xf32>
    %c2_i32_78 = arith.constant 2 : i32
    %174 = vector.broadcast %c2_i32_78 : i32 to vector<8x256xi32>
    %175 = arith.cmpi sge, %41, %174 : vector<8x256xi32>
    %c2_i32_79 = arith.constant 2 : i32
    %176 = tpu.dynamic_rotate %173 by %c2_i32_79 dim 1 : vector<8x256xf32>, i32 -> vector<8x256xf32>
    %cst_80 = arith.constant 0.000000e+00 : f32
    %177 = vector.broadcast %cst_80 : f32 to vector<8x256xf32>
    %178 = arith.select %175, %176, %177 : vector<8x256xi1>, vector<8x256xf32>
    %c254_i32_81 = arith.constant 254 : i32
    %179 = vector.broadcast %c254_i32_81 : i32 to vector<8x256xi32>
    %180 = arith.cmpi slt, %41, %179 : vector<8x256xi32>
    %c254_i32_82 = arith.constant 254 : i32
    %181 = tpu.dynamic_rotate %173 by %c254_i32_82 dim 1 : vector<8x256xf32>, i32 -> vector<8x256xf32>
    %cst_83 = arith.constant 0.000000e+00 : f32
    %182 = vector.broadcast %cst_83 : f32 to vector<8x256xf32>
    %183 = arith.select %180, %181, %182 : vector<8x256xi1>, vector<8x256xf32>
    %184 = tpu.concatenate %178, %173, %183 in 0 : vector<8x256xf32>, vector<8x256xf32>, vector<8x256xf32> -> vector<24x256xf32>
    %cst_84 = arith.constant dense<0.000000e+00> : vector<16x256xf32>
    %185 = tpu.matmul %166, %184, %cst_84 {dimension_numbers = #tpu.dot_dimension_numbers<[1], [0], [0], [1], [0, 0, 1, 1], [], []>} : vector<16x24xf32>, vector<24x256xf32>, vector<16x256xf32> -> vector<16x256xf32>
    %186 = vector.broadcast %167 : vector<16x1xf32> to vector<16x256xf32>
    %187 = arith.addf %185, %186 : vector<16x256xf32>
    %188 = arith.addf %187, %40 : vector<16x256xf32>
    %189 = vector.extract_strided_slice %188 {offsets = [0, 0], sizes = [8, 256], strides = [1, 1]} : vector<16x256xf32> to vector<8x256xf32>
    %190 = arith.negf %189 : vector<8x256xf32>
    %191 = math.exp %190 : vector<8x256xf32>
    %cst_85 = arith.constant 1.000000e+00 : f32
    %192 = vector.broadcast %cst_85 : f32 to vector<8x256xf32>
    %193 = arith.addf %192, %191 : vector<8x256xf32>
    %194 = arith.divf %192, %193 : vector<8x256xf32>
    %195 = vector.extract_strided_slice %188 {offsets = [8, 0], sizes = [8, 256], strides = [1, 1]} : vector<16x256xf32> to vector<8x256xf32>
    %196 = math.tanh %195 : vector<8x256xf32>
    %197 = arith.mulf %194, %196 : vector<8x256xf32>
    %cst_86 = arith.constant dense<0.000000e+00> : vector<16x256xf32>
    %198 = tpu.matmul %168, %197, %cst_86 {dimension_numbers = #tpu.dot_dimension_numbers<[1], [0], [0], [1], [0, 0, 1, 1], [], []>} : vector<16x8xf32>, vector<8x256xf32>, vector<16x256xf32> -> vector<16x256xf32>
    %199 = vector.broadcast %169 : vector<16x1xf32> to vector<16x256xf32>
    %200 = arith.addf %198, %199 : vector<16x256xf32>
    %201 = vector.extract_strided_slice %200 {offsets = [8, 0], sizes = [8, 256], strides = [1, 1]} : vector<16x256xf32> to vector<8x256xf32>
    %202 = arith.addf %165, %201 : vector<8x256xf32>
    %c184 = arith.constant 184 : index
    %c0_87 = arith.constant 0 : index
    %203 = vector.load %arg3[%c184, %c0_87] : memref<200x25xf32, #tpu.memory_space<vmem>>, vector<8x8xf32>
    %c184_88 = arith.constant 184 : index
    %c8_89 = arith.constant 8 : index
    %204 = vector.load %arg3[%c184_88, %c8_89] : memref<200x25xf32, #tpu.memory_space<vmem>>, vector<8x1xf32>
    %cst_90 = arith.constant 5.000000e-01 : f32
    %205 = vector.broadcast %cst_90 : f32 to vector<8x256xf32>
    %206 = arith.mulf %202, %205 : vector<8x256xf32>
    %cst_91 = arith.constant dense<0.000000e+00> : vector<8x256xf32>
    %207 = tpu.matmul %203, %206, %cst_91 {dimension_numbers = #tpu.dot_dimension_numbers<[1], [0], [0], [1], [0, 0, 1, 1], [], []>} : vector<8x8xf32>, vector<8x256xf32>, vector<8x256xf32> -> vector<8x256xf32>
    %208 = vector.broadcast %204 : vector<8x1xf32> to vector<8x256xf32>
    %209 = arith.addf %207, %208 : vector<8x256xf32>
    %cst_92 = arith.constant 0.000000e+00 : f32
    %210 = vector.broadcast %cst_92 : f32 to vector<8x256xf32>
    %211 = arith.maximumf %209, %210 : vector<8x256xf32>
    %c192 = arith.constant 192 : index
    %c0_93 = arith.constant 0 : index
    %212 = vector.load %arg3[%c192, %c0_93] : memref<200x25xf32, #tpu.memory_space<vmem>>, vector<8x1xf32>
    %c192_94 = arith.constant 192 : index
    %c1_95 = arith.constant 1 : index
    %213 = vector.load %arg3[%c192_94, %c1_95] : memref<200x25xf32, #tpu.memory_space<vmem>>, vector<1x1xf32>
    %214 = vector.broadcast %212 : vector<8x1xf32> to vector<8x256xf32>
    %215 = arith.mulf %214, %211 : vector<8x256xf32>
    %cst_96 = arith.constant dense<0.000000e+00> : vector<256xf32>
    %216 = vector.multi_reduction <add>, %215, %cst_96 [0] : vector<8x256xf32> to vector<256xf32>
    %217 = vector.shape_cast %216 : vector<256xf32> to vector<1x256xf32>
    %218 = vector.broadcast %213 : vector<1x1xf32> to vector<1x256xf32>
    %219 = arith.addf %217, %218 : vector<1x256xf32>
    %c0_97 = arith.constant 0 : index
    %c0_98 = arith.constant 0 : index
    %c0_99 = arith.constant 0 : index
    %220 = vector.load %arg4[%c0_97, %c0_98, %c0_99] : memref<1x1x256xf32, #tpu.memory_space<vmem>>, vector<1x1x256xf32>
    %221 = vector.shape_cast %220 : vector<1x1x256xf32> to vector<1x256xf32>
    %222 = vector.shape_cast %219 : vector<1x256xf32> to vector<1x1x256xf32>
    tpu.vector_store %arg4[%c0_97, %c0_98, %c0_99], %222 {strides = array<i32>} : memref<1x1x256xf32, #tpu.memory_space<vmem>>, vector<1x1x256xf32>,
    return
  }
  func.func @transform_0(%arg0: i32) -> (i32, i32, i32) {
    %c0_i32 = arith.constant 0 : i32
    %c0_i32_0 = arith.constant 0 : i32
    %c0_i32_1 = arith.constant 0 : i32
    return %arg0, %c0_i32, %c0_i32_0 : i32, i32, i32
  }
  func.func @transform_1(%arg0: i32) -> (i32, i32, i32, i32) {
    %c0_i32 = arith.constant 0 : i32
    %c0_i32_0 = arith.constant 0 : i32
    %c0_i32_1 = arith.constant 0 : i32
    %c0_i32_2 = arith.constant 0 : i32
    return %arg0, %c0_i32, %c0_i32_0, %c0_i32_1 : i32, i32, i32, i32
  }
  func.func @transform_2(%arg0: i32) -> (i32, i32) {
    %c0_i32 = arith.constant 0 : i32
    %c0_i32_0 = arith.constant 0 : i32
    %c0_i32_1 = arith.constant 0 : i32
    return %c0_i32, %c0_i32_0 : i32, i32
  }
  func.func @transform_3(%arg0: i32) -> (i32, i32, i32) {
    %c0_i32 = arith.constant 0 : i32
    %c0_i32_0 = arith.constant 0 : i32
    %c0_i32_1 = arith.constant 0 : i32
    return %arg0, %c0_i32, %c0_i32_0 : i32, i32, i32
  }
}

</mosaic_0001>

<bundles_post_ra>
// kernel: scse_forward.1
= control target key start
LH: loop header
LB: loop body
LE: loop exit
PB: predicated region body
PF: predicated region fallthrough
CT: control target
= control target key end

     0   :  { %8 = vsyncpa [#allocation3], 0  ;;  %s2390_s0 = inlined_call_operand.vmem [shape: f32[2,2,256], index: 0, kind: input, shape index: {}]   ;;  %s2391_s1 = inlined_call_operand.vmem [shape: f32[2,4,8,1], index: 1, kind: input, shape index: {}]   ;;  %s2392_s2 = inlined_call_operand.vmem [shape: f32[200,25], index: 2, kind: input, shape index: {}]   ;;  %s2393_s3 = inlined_call_operand.hbm [shape: f32[2,1,256], index: 3, kind: output, shape index: {}]  }
   0x1   :  { %10 = vsyncpa [#allocation3 + $0x1], 0  ;;  %s1967_s12 = smov 0   ;;  %s1969_s13 = smov 0  }
   0x2   :  { %s1971_s14 = smov 0   ;;  %s1973_s15 = smov 0  }
   0x3 LB: > { %s1988_s16 = sadd.s32 4294967295, %s1931_s15   ;;  %s1610_s17 = sadd.s32 4294967294, %s1931_s15   ;;  %s1931_s15 = sphi %s1973_s15, %s2403_s15   ;;  %s1927_s14 = sphi %s1971_s14, %s2402_s14   ;;  %s1923_s13 = sphi %s1969_s13, %s2401_s13   ;;  %s1919_s12 = sphi %s1967_s12, %s2400_s12  }
   0x4   : > { %s1992_s18 = sadd.s32 1, %s1931_s15   ;;  %s96_s19 = sadd.s32 1, %s1927_s14 }
   0x5   : > { %s93_s20 = ssub.s32 %s1931_s15, %s1992_s18  ;;  %p106_p0 = scmp.ne.s32.totalorder %s1927_s14, %s1923_s13 }
   0x6   : > { %p94_p1 = scmp.eq.s32.totalorder %s93_s20, 0  ;;  %p107_p2 = scmp.eq.s32.totalorder %s1988_s16, 1 }
   0x7   : > { %p112_p3 = scmp.ne.s32.totalorder %s1923_s13, %s1919_s12  ;;  %p113_p4 = scmp.eq.s32.totalorder %s1610_s17, 1 }
   0x8   : > { %s2003_s21 = scalar_select %p94_p1, %s1927_s14, %s96_s19  }
   0x9   : > { %p2005_p5 = por %p107_p2, %p106_p0  ;;  %p2009_p6 = por %p113_p4, %p112_p3 }
   0xa   : > { %p1613_p7 = scmp.ge.s32.totalorder %s1931_s15, 1  ;;  %p150_p8 = scmp.lt.s32.totalorder %s1931_s15, 3 }
   0xc   : > { %p151_p9 = pnand %p1613_p7, %p150_p8 }
   0xd   : > { %v190_v0 = vld [vmem:[%s2392_s2] sm:$0xff] (!%p151_p9)  ;;  %p179_p10 = scmp.lt.s32.totalorder (!%p151_p9), %s1988_s16, 1  ;;  %v1933_v1 = vmov (!%p151_p9), 2   ;;  %v1934_v2 = vmov (!%p151_p9), 0   ;;  %v1935_v3 = vmov (!%p151_p9), 1   ;;  %v251_v5 = vld [vmem:[%s2392_s2 + $0x8] sm:$0xff] (!%p151_p9)  ;;  %v197_v8 = vlaneseq (!%p151_p9) }
   0xe   : > { %154 = sbr.rel (%p151_p9) target bundleno = 2797 (0xaed), region = 32  ;;  %1763 = vset.pattern.permute.xlu1 (!%p151_p9), %v1933_v1  ;;  %1761 = vset.pattern.permute.xlu0 (!%p151_p9), %v1934_v2  ;;  %v252_v6 = vld [vmem:[%s2392_s2 + $0x10] sm:$0xff] (!%p151_p9)  ;;  %v1936_v7 = vmov (!%p151_p9), 0.0   ;;  %s1937_s17 = smov (!%p151_p9), 127   ;;  %v285_v56 = vld [vmem:[%s2392_s2 + $0x28] sm:$0xff] (!%p151_p9)  ;;  %v1939_v57 = vmov (!%p151_p9), 16  }
   0xf   : > { %244 = vperm.xlu1 (!%p151_p9), %1763, %v190_v0   ;;  %193 = vperm.xlu0 (!%p151_p9), %1761, %v190_v0   ;;  %v2040_v9 = vshrl.u32 (!%p151_p9), %v197_v8, 7  ;;  %s1938_s19 = smov (!%p151_p9), 1   ;;  %v286_v60 = vld [vmem:[%s2392_s2 + $0x30] sm:$0xff] (!%p151_p9)  ;;  %v283_v61 = vld [vmem:[%s2392_s2 + $0x18] sm:$0xff] (!%p151_p9)  ;;  %vm307_vm0 = vcmask (!%p151_p9), 130048   ;;  %v284_v62 = vld [vmem:[%s2392_s2 + $0x20] sm:$0xff] (!%p151_p9) }
  0x10   : > { %380 = vmatprep.mubr.f32.mxu0 (!%p151_p9), %v1936_v7  ;;  %549 = vmatprep.mubr.f32.mxu1 (!%p151_p9), %v1936_v7  ;;  %v436_v63 = vld [vmem:[%s2392_s2 + $0x38] sm:$0xff] (!%p151_p9)  ;;  %v437_v1 = vld [vmem:[%s2392_s2 + $0x40] sm:$0xff] (!%p151_p9)  ;;  %vm1941_vm4 = vmmov (!%p151_p9), 1   ;;  %vm480_vm7 = vcmask (!%p151_p9), 195584   ;;  %vm592_vm8 = vcmask (!%p151_p9), 64512   ;;  %s1944_s20 = smov (!%p151_p9), 2  }
  0x11   : > { %v199_v10 = vsub.s32 (!%p151_p9), 0, %v2040_v9  ;;  %v203_v11 = vsub.s32 (!%p151_p9), 2, %v2040_v9  ;;  %v223_v12 = vsub.s32 (!%p151_p9), 1, %v2040_v9  ;;  %v227_v13 = vsub.s32 (!%p151_p9), 3, %v2040_v9  ;;  %s176_s10 = sand.u32 (!%p151_p9), 1, %s1923_s13  }
  0x12   : > { %s1614_s24 = sshll.u32 (!%p151_p9), %s176_s10, 1  ;;  %vm1521_vm14 = vcmp.lt.s32.totalorder (!%p151_p9), %v197_v8, 256  ;;  %s1525_s28 = scalar_lea.sflag (!%p151_p9), [#allocation3], %s176_s10 }
  0x13   : > { %1764 = vset.pattern.permute.xlu1 (!%p151_p9), %v1934_v2  ;;  %1762 = vset.pattern.permute.xlu0 (!%p151_p9), %v1935_v3  ;;  %s178_s25 = scalar_lea.vmem (!%p151_p9), [#allocation2], %s1614_s24 }
  0x14   : > { %218 = vperm.xlu0 (!%p151_p9), %1762, %v190_v0   ;;  %v1940_v0 = vmov (!%p151_p9), 24  }
  0x15   : > { %s180_s26 = scalar_select %p179_p10, %s1988_s16, 1 }
  0x17   : > { %s1669_s27 = sshll.u32 %s180_s26, 5  ;;  %s1668_s8 = sshll.u32 %s180_s26, 2 }
  0x18   : > { %s2024_s30 = scalar_lea.vmem %s2391_s1, %s1669_s27  ;;  %1765 = vset.pattern.permute.xlu0 %v1934_v2  ;;  %s183_s11 = scalar_lea.vmem %s2390_s0, %s1668_s8 }
  0x19   : > { %v440_v4 = vld [vmem:[%s2024_s30] sm:$0xff]  ;;  %260 = vperm.xlu0 %1765, %v252_v6   ;;  %s1539_s26 = sshll.u32 %s178_s25, 4  ;;  %s2350_s26 = int_to_ptr.vmem [resolvable:$true] %s1539_s26 }
  0x1a   : > { %443 = vperm.xlu1 %1764, %v440_v4   ;;  %v189_v14 = vld [vmem:[%s183_s11] sm:$0xf]  ;;  %v2099_v4 = vand.u32 127, %v197_v8  ;;  %s1943_s11 = smov 126   ;;  %s1869_s29 = scalar_lea.vmem %s2350_s26, 32 }
  0x1b   : > { %v200_v15 = vrot.slane %v189_v14, %v199_v10  ;;  %v204_v16 = vrot.slane %v189_v14, %v203_v11  ;;  %v224_v17 = vrot.slane %v189_v14, %v223_v12  ;;  %v228_v18 = vrot.slane %v189_v14, %v227_v13  ;;  %p1870_p11 = scmp.ne.s32.totalorder %s2350_s26, %s1869_s29 }
  0x1c   : > { %vm454_vm1 = vcmp.lt.s32.totalorder %v2099_v4, 1  ;;  %vm448_vm2 = vcmp.ge.s32.totalorder %v2099_v4, 1  ;;  %v2104_v11 = vadd.s32 128, %v2099_v4  ;;  %vm465_vm3 = vcmp.lt.s32.totalorder %v2099_v4, 127 }
  0x1d   : > { %v210_v21 = vrot.slane %v200_v15, %v199_v10  ;;  %v214_v22 = vrot.slane %v204_v16, %v199_v10  ;;  %v234_v23 = vrot.slane %v224_v17, %v223_v12  ;;  %v238_v24 = vrot.slane %v228_v18, %v223_v12  ;;  %1773 = vset.pattern.permute.xlu0 %v1939_v57  ;;  %vm2114_vm5 = vmpackc.low %vm1941_vm4, %vm448_vm2  ;;  %v2259_v17 = vld [vmem:[%s2392_s2 + $0x90] sm:$0xff]  ;;  %p1871_p12 = pnand %p1870_p11, %p2005_p5 }
  0x1e   : > { %255 = vperm.xlu1 %1764, %v251_v5   ;;  %vm460_vm6 = vcmp.lt.s32.totalorder %v2104_v11, 255  ;;  %vm699_vm9 = vcmp.lt.s32.totalorder %v2099_v4, 2  ;;  %vm693_vm10 = vcmp.ge.s32.totalorder %v2099_v4, 2  ;;  %vm710_vm12 = vcmp.lt.s32.totalorder %v2099_v4, 126  ;;  %v1163_v4 = vld [vmem:[%s2392_s2 + $0xb0] sm:$0xff] }
  0x1f   : > { %vm2184_vm11 = vmpackc.low %vm1941_vm4, %vm693_vm10  ;;  %vm705_vm13 = vcmp.lt.s32.totalorder %v2104_v11, 254  ;;  %v2318_v11 = vld [vmem:[%s2392_s2 + $0xb8] sm:$0xff]  ;;  %p1872_p13 = pneg %p1871_p12 }
  0x22   : > { %1766 = vset.pattern.permute.xlu1 %v1935_v3 }
  0x23   : > { %268 = vperm.xlu1 %1766, %v251_v5  }
  0x27   : > { %272 = vperm.xlu1 %1766, %v252_v6  }
  0x2b   : > { %1772 = vset.pattern.permute.xlu1 %v1939_v57 }
  0x8e   : > { %v194_v19 = vpop.permute.xlu0 %193  ;;  %v245_v20 = vpop.permute.xlu1 %244 }
  0x8f   : > { %v215_v27 = vmul.f32 %v210_v21, %v194_v19  ;;  %v216_v28 = vmul.f32 %v214_v22, %v194_v19 }
  0x93   : > { %v219_v25 = vpop.permute.xlu0 %218 }
  0x94   : > { %v239_v29 = vmul.f32 %v234_v23, %v219_v25  ;;  %v240_v30 = vmul.f32 %v238_v24, %v219_v25 }
  0x96   : > { %v241_v31 = vadd.f32 %v239_v29, %v215_v27  ;;  %v242_v32 = vadd.f32 %v240_v30, %v216_v28 }
  0x98   : > { %v2049_v34 = vadd.f32 %v245_v20, %v241_v31  ;;  %v2051_v35 = vadd.f32 %v245_v20, %v242_v32  ;;  %v261_v38 = vpop.permute.xlu0 %260 }
  0x99   : > { %v444_v26 = vpop.permute.xlu1 %443  ;;  %v265_v44 = vmul.f32 %v261_v38, %v234_v23  ;;  %v266_v45 = vmul.f32 %v261_v38, %v238_v24 }
  0x9a   : > { %v249_v36 = vmax.f32 %v2049_v34, 0.0  ;;  %v250_v37 = vmax.f32 %v2051_v35, 0.0  ;;  %v680_v34 = vld [vmem:[%s2392_s2 + $0x48] sm:$0xff]  ;;  %v681_v35 = vld [vmem:[%s2392_s2 + $0x50] sm:$0xff] }
  0x9c   : > { %v2057_v41 = vadd.f32 %v444_v26, %v249_v36  ;;  %v2061_v42 = vadd.f32 %v444_v26, %v250_v37 }
  0x9d   : > { %v256_v33 = vpop.permute.xlu1 %255 }
  0x9e   : > { %v263_v39 = vmul.f32 %v256_v33, %v234_v23  ;;  %v264_v40 = vmul.f32 %v256_v33, %v238_v24  ;;  %461 = vrot.lane.b32.xlu1 %v2057_v41, %s1937_s17  ;;  %v1767_v46 = vpack.i.bf16 %v2061_v42, %v2057_v41 }
  0xa0   : > { %1768 = vrot.lane.b32.xlu0 %v1767_v46, %s1938_s19 }
  0xa2   : > { %v269_v43 = vpop.permute.xlu1 %268  ;;  %299 = vperm.xlu1 %1772, %v285_v56  }
  0xa3   : > { %v275_v47 = vadd.f32 %v269_v43, %v263_v39  ;;  %v276_v48 = vadd.f32 %v269_v43, %v264_v40 }
  0xa4   : > { %463 = vrot.lane.b32.xlu0 %v2061_v42, %s1937_s17 }
  0xa5   : > { %v279_v52 = vmax.f32 %v275_v47, 0.0  ;;  %v280_v54 = vmax.f32 %v276_v48, 0.0  ;;  %v2135_v47 = vld [vmem:[%s2392_s2 + $0x78] sm:$0xff]  ;;  %v1942_v48 = vmov 8  }
  0xa6   : > { %v273_v49 = vpop.permute.xlu1 %272  ;;  %289 = vperm.xlu1 %1772, %v283_v61  }
  0xa7   : > { %v277_v50 = vadd.f32 %v273_v49, %v265_v44  ;;  %v278_v51 = vadd.f32 %v273_v49, %v266_v45  ;;  %v1635_v44 = vld [vmem:[%s2024_s30 + $0x8] sm:$0xff] }
  0xa8   : > { %304 = vperm.xlu0 %1773, %v286_v60  }
  0xa9   : > { %v281_v53 = vmax.f32 %v277_v50, 0.0  ;;  %v282_v55 = vmax.f32 %v278_v51, 0.0 }
  0xaa   : > { %1774 = vset.pattern.permute.xlu1 %v1940_v0 }
  0xab   : > { %v1671_v58 = vpack.c.bf16 %v282_v55, %v280_v54  ;;  %v1673_v59 = vpack.c.bf16 %v281_v53, %v279_v52  ;;  %472 = vperm.xlu1 %1774, %v436_v63  }
  0xac   : > { %294 = vperm.xlu0 %1773, %v284_v62  }
  0xad   : > { %1672 = vmatprep.subr.bf16.mxu0 %v1671_v58 }
  0xae   : > { %1674 = vmatpush1.bf16.msra.mxu0 %v1673_v59 }
  0xaf   : > { %477 = vperm.xlu1 %1774, %v437_v1  }
  0xb0   : > { %1775 = vset.pattern.permute.xlu0 %v1942_v48 }
  0xb1   : > { %1619 = vmatmul.mubr.msk.f32.vlgmr.msra.gmra.mrb[0].mxu0 %vm307_vm0, %v283_v61  ;;  %584 = vperm.xlu0 %1775, %v2135_v47  }
  0xb2   : > { %386 = vmatprep.mubr.f32.mxu0 %v1936_v7 }
  0xb3   : > { %1776 = vset.pattern.permute.xlu1 %v1934_v2 }
  0xb4   : > { %688 = vperm.xlu1 %1776, %v1635_v44  }
  0xb5   : > { %1620 = vmatmul.mubr.msk.f32.gmra.mrb[2].mxu0 %vm307_vm0, %v284_v62  ;;  %1782 = vset.pattern.permute.xlu0 %v1940_v0 }
  0xb6   : > { %392 = vmatprep.mubr.f32.mxu0 %v1936_v7 }
  0xb8   : > { %1783 = vset.pattern.permute.xlu1 %v1940_v0 }
  0xb9   : > { %1621 = vmatmul.mubr.msk.f32.gmra.mrb[4].mxu0 %vm307_vm0, %v285_v56 }
  0xba   : > { %398 = vmatprep.mubr.f32.mxu0 %v1936_v7 }
  0xbd   : > { %1622 = vmatmul.mubr.msk.f32.gmra.mrb[6].mxu0 %vm307_vm0, %v286_v60 }
  0xbe   : > { %793 = vmatprep.mubr.f32.mxu0 %v1936_v7 }
 0x110   : > { %v462_v18 = vpop.permute.xlu1 %461 }
 0x112   : > { %v1769_v5 = vpop.permute.xlu0 %1768 }
 0x113   : > { %v1771_v6 = vunpack.i.h.bf16 %v1769_v5  ;;  %v1770_v10 = vunpack.i.l.bf16 %v1769_v5 }
 0x115   : > { %v455_v12 = vsel %vm454_vm1, %v1770_v10, %v1771_v6  ;;  %v456_v13 = vsel %vm454_vm1, %v1771_v6, %v1770_v10 }
 0x116   : > { %v464_v14 = vpop.permute.xlu0 %463  ;;  %v1675_v15 = vpack.c.bf16 %v2061_v42, %v455_v12  ;;  %v1677_v16 = vpack.c.bf16 %v2057_v41, %v456_v13 }
 0x117   : > { %v467_v19 = vsel %vm465_vm3, %v464_v14, %v462_v18  ;;  %v466_v20 = vsel %vm465_vm3, %v462_v18, %v464_v14 }
 0x118   : > { %1676 = vmatprep.subr.bf16.mxu1 %v1675_v15 }
 0x119   : > { %1679 = vmatpush1.bf16.msk.msra.mxu1 %vm2114_vm5, %v1677_v16 }
 0x11a   : > { %1628 = vmatprep.subr.msk.mxu1 %vm460_vm6, %v467_v19 }
 0x11d   : > { %490 = vmatpush1.msra.mxu1 %v466_v20 }
 0x11e   : > { %1629 = vmatmul.mubr.msk.f32.vlgmr.msra.gmra.mrb[0].mxu1 %vm480_vm7, %v436_v63 }
 0x11f   : > { %555 = vmatprep.mubr.f32.mxu1 %v1936_v7 }
 0x121   : > { %v300_v25 = vpop.permute.xlu1 %299 }
 0x122   : > { %1630 = vmatmul.mubr.msk.f32.gmra.mrb[2].mxu1 %vm480_vm7, %v437_v1 }
 0x123   : > { %661 = vmatprep.mubr.f32.mxu1 %v1936_v7 }
 0x125   : > { %v290_v54 = vpop.permute.xlu1 %289 }
 0x127   : > { %v305_v30 = vpop.permute.xlu0 %304 }
 0x12a   : > { %v473_v12 = vpop.permute.xlu1 %472 }
 0x12b   : > { %v295_v57 = vpop.permute.xlu0 %294 }
 0x184   : > { %v382_v21 = vpop.f32.mrb[0].mxu0 }
 0x185   : > { %v384_v22 = vpop.f32.mrb[1].mxu0  ;;  %v383_v55 = vadd.f32 %v382_v21, %v290_v54 }
 0x186   : > { %v385_v56 = vadd.f32 %v384_v22, %v290_v54 }
 0x188   : > { %v388_v23 = vpop.f32.mrb[2].mxu0 }
 0x189   : > { %v390_v24 = vpop.f32.mrb[3].mxu0  ;;  %v389_v61 = vadd.f32 %v388_v23, %v295_v57 }
 0x18a   : > { %v391_v63 = vadd.f32 %v390_v24, %v295_v57  ;;  %v478_v24 = vpop.permute.xlu1 %477 }
 0x18c   : > { %v394_v26 = vpop.f32.mrb[4].mxu0 }
 0x18d   : > { %v396_v27 = vpop.f32.mrb[5].mxu0  ;;  %v395_v28 = vadd.f32 %v394_v26, %v300_v25 }
 0x18e   : > { %v397_v29 = vadd.f32 %v396_v27, %v300_v25 }
 0x18f   : > { %v1623_v31 = vmul.f32 -1.442695, %v395_v28 }
 0x190   : > { %v1624_v32 = vmul.f32 -1.442695, %v397_v29  ;;  %v400_v33 = vpop.f32.mrb[6].mxu0 }
 0x191   : > { %1805 = vpow2.f32 %v1623_v31  ;;  %v402_v38 = vpop.f32.mrb[7].mxu0  ;;  %v401_v39 = vadd.f32 %v400_v33, %v305_v30 }
 0x192   : > { %1807 = vpow2.f32 %v1624_v32  ;;  %v403_v40 = vadd.f32 %v402_v38, %v305_v30 }
 0x193   : > { %v1625_v41 = vmul.f32 -1.442695, %v401_v39 }
 0x194   : > { %v1626_v42 = vmul.f32 -1.442695, %v403_v40 }
 0x195   : > { %1809 = vpow2.f32 %v1625_v41 }
 0x196   : > { %1811 = vpow2.f32 %v1626_v42 }
 0x19b   : > { %v1806_v43 = vpop.eup %1805 }
 0x19c   : > { %v1808_v45 = vpop.eup %1807  ;;  %v417_v46 = vadd.f32 1.0, %v1806_v43  ;;  %v585_v43 = vpop.permute.xlu0 %584 }
 0x19d   : > { %v418_v49 = vadd.f32 1.0, %v1808_v45 }
 0x19e   : > { %1813 = vrcp.f32 %v417_v46 }
 0x19f   : > { %v1810_v50 = vpop.eup %1809  ;;  %1815 = vrcp.f32 %v418_v49 }
 0x1a0   : > { %v1812_v51 = vpop.eup %1811  ;;  %v419_v52 = vadd.f32 1.0, %v1810_v50 }
 0x1a1   : > { %v420_v53 = vadd.f32 1.0, %v1812_v51 }
 0x1a2   : > { %1817 = vrcp.f32 %v419_v52  ;;  %v689_v52 = vpop.permute.xlu1 %688 }
 0x1a3   : > { %1819 = vrcp.f32 %v420_v53 }
 0x1a8   : > { %v1814_v58 = vpop.eup %1813 }
 0x1a9   : > { %v1816_v59 = vpop.eup %1815  ;;  %v2141_v60 = vmul.f32 %v1814_v58, %v383_v55 }
 0x1aa   : > { %v2143_v62 = vmul.f32 %v1816_v59, %v385_v56 }
 0x1ac   : > { %v1818_v1 = vpop.eup %1817 }
 0x1ad   : > { %v1820_v5 = vpop.eup %1819  ;;  %v2145_v6 = vmul.f32 %v1818_v1, %v389_v61  ;;  %v926_v61 = vld [vmem:[%s2392_s2 + $0xa0] sm:$0xff] }
 0x1ae   : > { %v2147_v10 = vmul.f32 %v1820_v5, %v391_v63 }
 0x1f1   : > { %v551_v13 = vpop.f32.mrb[0].mxu1 }
 0x1f2   : > { %v552_v14 = vadd.f32 %v551_v13, %v473_v12  ;;  %v553_v15 = vpop.f32.mrb[1].mxu1 }
 0x1f3   : > { %v554_v16 = vadd.f32 %v553_v15, %v473_v12  ;;  %v2205_v15 = vld [vmem:[%s2392_s2 + $0x80] sm:$0xff] }
 0x1f4   : > { %v562_v18 = vadd.f32 %v552_v14, %v2141_v60 }
 0x1f5   : > { %v563_v19 = vadd.f32 %v554_v16, %v2143_v62  ;;  %v557_v20 = vpop.f32.mrb[2].mxu1  ;;  %v682_v16 = vld [vmem:[%s2392_s2 + $0x88] sm:$0xff] }
 0x1f6   : > { %v1631_v21 = vmul.f32 -1.442695, %v562_v18  ;;  %v559_v22 = vpop.f32.mrb[3].mxu1  ;;  %v558_v25 = vadd.f32 %v557_v20, %v478_v24  ;;  %v1644_v18 = vld [vmem:[%s2024_s30 + $0x10] sm:$0xff] }
 0x1f7   : > { %v1632_v23 = vmul.f32 -1.442695, %v563_v19  ;;  %v560_v26 = vadd.f32 %v559_v22, %v478_v24 }
 0x1f8   : > { %1821 = vpow2.f32 %v1631_v21  ;;  %v564_v27 = vadd.f32 %v558_v25, %v2145_v6 }
 0x1f9   : > { %1823 = vpow2.f32 %v1632_v23  ;;  %v565_v28 = vadd.f32 %v560_v26, %v2147_v10 }
 0x1fa   : > { %1825 = vtanh.f32 %v564_v27 }
 0x1fb   : > { %1827 = vtanh.f32 %v565_v28 }
 0x202   : > { %v1822_v29 = vpop.eup %1821 }
 0x203   : > { %v1824_v30 = vpop.eup %1823  ;;  %v572_v31 = vadd.f32 1.0, %v1822_v29 }
 0x204   : > { %v573_v32 = vadd.f32 1.0, %v1824_v30  ;;  %v1826_v33 = vpop.eup %1825 }
 0x205   : > { %1829 = vrcp.f32 %v572_v31  ;;  %v1828_v38 = vpop.eup %1827 }
 0x206   : > { %1831 = vrcp.f32 %v573_v32 }
 0x20f   : > { %v1830_v39 = vpop.eup %1829 }
 0x210   : > { %v1832_v40 = vpop.eup %1831  ;;  %v580_v41 = vmul.f32 %v1830_v39, %v1826_v33 }
 0x211   : > { %v581_v42 = vmul.f32 %v1832_v40, %v1828_v38 }
 0x213   : > { %597 = vmatprep.subr.mxu1 %v581_v42 }
 0x214   : > { %598 = vmatpush1.msra.mxu1 %v580_v41 }
 0x215   : > { %1633 = vmatmul.mubr.msk.f32.vlgmr.msra.gmra.mrb[4].mxu1 %vm592_vm8, %v2135_v47 }
 0x216   : > { %667 = vmatprep.mubr.f32.mxu1 %v1936_v7 }
 0x219   : > { %1634 = vmatmul.mubr.msk.f32.gmra.mrb[6].mxu1 %vm592_vm8, %v2205_v15 }
 0x21a   : > { %904 = vmatprep.mubr.f32.mxu1 %v1936_v7 }
 0x2e8   : > { %v663_v44 = vpop.f32.mrb[4].mxu1 }
 0x2e9   : > { %v664_v45 = vadd.f32 %v663_v44, %v585_v43  ;;  %v665_v46 = vpop.f32.mrb[5].mxu1 }
 0x2ea   : > { %v666_v49 = vadd.f32 %v665_v46, %v585_v43 }
 0x2eb   : > { %v674_v50 = vadd.f32 %v664_v45, %v249_v36 }
 0x2ec   : > { %v675_v51 = vadd.f32 %v666_v49, %v250_v37 }
 0x2ed   : > { %v2160_v53 = vmul.f32 0.70710677, %v674_v50 }
 0x2ee   : > { %v2162_v54 = vmul.f32 0.70710677, %v675_v51 }
 0x2ef   : > { %v691_v47 = vadd.f32 %v689_v52, %v2160_v53 }
 0x2f0   : > { %v692_v55 = vadd.f32 %v689_v52, %v2162_v54 }
 0x2f1   : > { %706 = vrot.lane.b32.xlu0 %v691_v47, %s1943_s11 }
 0x2f2   : > { %v1777_v56 = vpack.i.bf16 %v692_v55, %v691_v47 }
 0x2f4   : > { %1778 = vrot.lane.b32.xlu1 %v1777_v56, %s1944_s20 }
 0x2f5   : > { %717 = vperm.xlu0 %1782, %v680_v34  }
 0x2f8   : > { %708 = vrot.lane.b32.xlu1 %v692_v55, %s1943_s11 }
 0x2f9   : > { %1785 = vset.pattern.permute.xlu0 %v1934_v2 }
 0x2fa   : > { %931 = vperm.xlu0 %1785, %v1644_v18  }
 0x2fc   : > { %722 = vperm.xlu1 %1783, %v681_v35  }
 0x2fe   : > { %1792 = vset.pattern.permute.xlu0 %v1940_v0 }
 0x300   : > { %1784 = vset.pattern.permute.xlu1 %v1942_v48 }
 0x301   : > { %828 = vperm.xlu1 %1784, %v682_v16  }
 0x305   : > { %1791 = vset.pattern.permute.xlu1 %v1940_v0 }
 0x363   : > { %v707_v12 = vpop.permute.xlu0 %706 }
 0x366   : > { %v1779_v36 = vpop.permute.xlu1 %1778 }
 0x367   : > { %v1781_v37 = vunpack.i.h.bf16 %v1779_v36  ;;  %v1780_v57 = vunpack.i.l.bf16 %v1779_v36 }
 0x369   : > { %v701_v58 = vsel %vm699_vm9, %v1781_v37, %v1780_v57  ;;  %v700_v59 = vsel %vm699_vm9, %v1780_v57, %v1781_v37 }
 0x36a   : > { %v1682_v63 = vpack.c.bf16 %v691_v47, %v701_v58  ;;  %v709_v1 = vpop.permute.xlu1 %708  ;;  %v1680_v5 = vpack.c.bf16 %v692_v55, %v700_v59 }
 0x36b   : > { %v712_v13 = vsel %vm710_vm12, %v709_v1, %v707_v12  ;;  %v711_v14 = vsel %vm710_vm12, %v707_v12, %v709_v1 }
 0x36c   : > { %1681 = vmatprep.subr.bf16.mxu0 %v1680_v5 }
 0x36d   : > { %1684 = vmatpush1.bf16.msk.msra.mxu0 %vm2184_vm11, %v1682_v63 }
 0x36e   : > { %1637 = vmatprep.subr.msk.mxu0 %vm705_vm13, %v712_v13 }
 0x371   : > { %734 = vmatpush1.msra.mxu0 %v711_v14 }
 0x372   : > { %1638 = vmatmul.mubr.msk.f32.vlgmr.msra.gmra.mrb[8].mxu0 %vm480_vm7, %v680_v34 }
 0x373   : > { %799 = vmatprep.mubr.f32.mxu0 %v1936_v7 }
 0x374   : > { %v718_v19 = vpop.permute.xlu0 %717 }
 0x376   : > { %1639 = vmatmul.mubr.msk.f32.gmra.mrb[10].mxu0 %vm480_vm7, %v681_v35 }
 0x377   : > { %1030 = vmatprep.mubr.f32.mxu0 %v1936_v7 }
 0x379   : > { %v932_v36 = vpop.permute.xlu0 %931 }
 0x37b   : > { %v723_v30 = vpop.permute.xlu1 %722 }
 0x380   : > { %v829_v51 = vpop.permute.xlu1 %828 }
 0x445   : > { %v795_v20 = vpop.f32.mrb[8].mxu0 }
 0x446   : > { %v796_v21 = vadd.f32 %v795_v20, %v718_v19  ;;  %v797_v22 = vpop.f32.mrb[9].mxu0 }
 0x447   : > { %v798_v23 = vadd.f32 %v797_v22, %v718_v19 }
 0x448   : > { %v806_v24 = vadd.f32 %v796_v21, %v2141_v60 }
 0x449   : > { %v807_v25 = vadd.f32 %v798_v23, %v2143_v62  ;;  %v801_v26 = vpop.f32.mrb[10].mxu0  ;;  %v925_v23 = vld [vmem:[%s2392_s2 + $0x98] sm:$0xff] }
 0x44a   : > { %v1640_v27 = vmul.f32 -1.442695, %v806_v24  ;;  %v803_v28 = vpop.f32.mrb[11].mxu0  ;;  %v802_v31 = vadd.f32 %v801_v26, %v723_v30  ;;  %v1653_v24 = vld [vmem:[%s2024_s30 + $0x18] sm:$0xff]  ;;  %s1670_s30 = sshll.u32 %s1988_s16, 5  ;;  %s1946_s16 = smov [#allocation2]  }
 0x44b   : > { %v1641_v29 = vmul.f32 -1.442695, %v807_v25  ;;  %v804_v32 = vadd.f32 %v803_v28, %v723_v30  ;;  %s1873_s4 = sshll.u32 %s1946_s16, 4  ;;  %s1874_s4 = int_to_ptr.vmem [resolvable:$false] %s1873_s4 }
 0x44c   : > { %1833 = vpow2.f32 %v1640_v27  ;;  %v808_v33 = vadd.f32 %v802_v31, %v2145_v6  ;;  %s1875_s5 = scalar_lea.vmem %s1874_s4, 64  ;;  %p1876_p0 = scmp.lt.s32.totalorder %s2350_s26, %s1874_s4 }
 0x44d   : > { %1835 = vpow2.f32 %v1641_v29  ;;  %v809_v38 = vadd.f32 %v804_v32, %v2147_v10  ;;  %p1877_p1 = scmp.lt.s32.totalorder %s1875_s5, %s1869_s29 }
 0x44e   : > { %1837 = vtanh.f32 %v808_v33 }
 0x44f   : > { %1839 = vtanh.f32 %v809_v38  ;;  %p1878_p2 = por %p1877_p1, %p1876_p0 }
 0x451   : > { %p1879_p3 = pnand %p1878_p2, %p1872_p13 }
 0x456   : > { %v1834_v39 = vpop.eup %1833 }
 0x457   : > { %v1836_v40 = vpop.eup %1835  ;;  %v816_v41 = vadd.f32 1.0, %v1834_v39 }
 0x458   : > { %v817_v42 = vadd.f32 1.0, %v1836_v40  ;;  %v1838_v43 = vpop.eup %1837 }
 0x459   : > { %1841 = vrcp.f32 %v816_v41  ;;  %v1840_v44 = vpop.eup %1839 }
 0x45a   : > { %1843 = vrcp.f32 %v817_v42 }
 0x463   : > { %v1842_v45 = vpop.eup %1841 }
 0x464   : > { %v1844_v46 = vpop.eup %1843  ;;  %v824_v49 = vmul.f32 %v1842_v45, %v1838_v43 }
 0x465   : > { %v825_v50 = vmul.f32 %v1844_v46, %v1840_v44 }
 0x467   : > { %840 = vmatprep.subr.mxu1 %v825_v50 }
 0x468   : > { %841 = vmatpush1.msra.mxu1 %v824_v49 }
 0x469   : > { %1642 = vmatmul.mubr.msk.f32.vlgmr.msra.gmra.mrb[8].mxu1 %vm592_vm8, %v682_v16 }
 0x46a   : > { %910 = vmatprep.mubr.f32.mxu1 %v1936_v7 }
 0x46d   : > { %1643 = vmatmul.mubr.msk.f32.gmra.mrb[6].mxu1 %vm592_vm8, %v2259_v17 }
 0x46e   : > { %1141 = vmatprep.mubr.f32.mxu1 %v1936_v7 }
 0x53c   : > { %v906_v52 = vpop.f32.mrb[8].mxu1 }
 0x53d   : > { %v907_v47 = vadd.f32 %v906_v52, %v829_v51  ;;  %v908_v55 = vpop.f32.mrb[9].mxu1 }
 0x53e   : > { %v909_v56 = vadd.f32 %v908_v55, %v829_v51 }
 0x53f   : > { %v917_v34 = vadd.f32 %v907_v47, %v2160_v53  ;;  %v924_v53 = vld [vmem:[%s2392_s2 + $0x60] sm:$0xff] }
 0x540   : > { %v918_v35 = vadd.f32 %v909_v56, %v2162_v54  ;;  %v923_v54 = vld [vmem:[%s2392_s2 + $0x58] sm:$0xff] }
 0x541   : > { %v2224_v37 = vmul.f32 0.70710677, %v917_v34 }
 0x542   : > { %v2226_v57 = vmul.f32 0.70710677, %v918_v35 }
 0x543   : > { %v934_v58 = vadd.f32 %v932_v36, %v2224_v37 }
 0x544   : > { %v935_v59 = vadd.f32 %v932_v36, %v2226_v57 }
 0x546   : > { %946 = vrot.lane.b32.xlu0 %v935_v59, %s1937_s17  ;;  %v1786_v63 = vpack.i.bf16 %v935_v59, %v934_v58 }
 0x548   : > { %1787 = vrot.lane.b32.xlu1 %v1786_v63, %s1938_s19 }
 0x54a   : > { %959 = vperm.xlu0 %1792, %v924_v53  }
 0x54c   : > { %944 = vrot.lane.b32.xlu1 %v934_v58, %s1937_s17 }
 0x550   : > { %954 = vperm.xlu1 %1791, %v923_v54  }
 0x554   : > { %1793 = vset.pattern.permute.xlu1 %v1942_v48 }
 0x555   : > { %1065 = vperm.xlu1 %1793, %v925_v23  }
 0x559   : > { %1794 = vset.pattern.permute.xlu1 %v1934_v2 }
 0x55a   : > { %1168 = vperm.xlu1 %1794, %v1653_v24  }
 0x55e   : > { %1800 = vset.pattern.permute.xlu1 %v1940_v0 }
 0x5b8   : > { %v947_v20 = vpop.permute.xlu0 %946 }
 0x5ba   : > { %v1788_v1 = vpop.permute.xlu1 %1787 }
 0x5bb   : > { %v1790_v5 = vunpack.i.h.bf16 %v1788_v1  ;;  %v1789_v12 = vunpack.i.l.bf16 %v1788_v1 }
 0x5bd   : > { %v941_v13 = vsel %vm454_vm1, %v1790_v5, %v1789_v12  ;;  %v940_v14 = vsel %vm454_vm1, %v1789_v12, %v1790_v5 }
 0x5be   : > { %v1687_v16 = vpack.c.bf16 %v934_v58, %v941_v13  ;;  %v945_v18 = vpop.permute.xlu1 %944  ;;  %v1685_v19 = vpack.c.bf16 %v935_v59, %v940_v14 }
 0x5bf   : > { %v949_v21 = vsel %vm465_vm3, %v947_v20, %v945_v18  ;;  %v948_v22 = vsel %vm465_vm3, %v945_v18, %v947_v20 }
 0x5c0   : > { %1686 = vmatprep.subr.bf16.mxu0 %v1685_v19 }
 0x5c1   : > { %1689 = vmatpush1.bf16.msk.msra.mxu0 %vm2114_vm5, %v1687_v16  ;;  %v1160_v16 = vld [vmem:[%s2392_s2 + $0x68] sm:$0xff] }
 0x5c2   : > { %1646 = vmatprep.subr.msk.mxu0 %vm460_vm6, %v949_v21 }
 0x5c5   : > { %971 = vmatpush1.msra.mxu0 %v948_v22 }
 0x5c6   : > { %1647 = vmatmul.mubr.msk.f32.vlgmr.msra.gmra.mrb[12].mxu0 %vm480_vm7, %v923_v54 }
 0x5c7   : > { %1036 = vmatprep.mubr.f32.mxu0 %v1936_v7 }
 0x5c9   : > { %v960_v40 = vpop.permute.xlu0 %959 }
 0x5ca   : > { %1648 = vmatmul.mubr.msk.f32.gmra.mrb[14].mxu0 %vm480_vm7, %v924_v53 }
 0x5cb   : > { %1267 = vmatprep.mubr.f32.mxu0 %v1936_v7 }
 0x5cf   : > { %v955_v25 = vpop.permute.xlu1 %954 }
 0x5d4   : > { %v1066_v34 = vpop.permute.xlu1 %1065 }
 0x5d9   : > { %v1169_v54 = vpop.permute.xlu1 %1168 }
 0x699   : > { %v1032_v26 = vpop.f32.mrb[12].mxu0 }
 0x69a   : > { %v1033_v27 = vadd.f32 %v1032_v26, %v955_v25  ;;  %v1034_v28 = vpop.f32.mrb[13].mxu0 }
 0x69b   : > { %v1035_v29 = vadd.f32 %v1034_v28, %v955_v25 }
 0x69c   : > { %v1043_v30 = vadd.f32 %v1033_v27, %v2141_v60 }
 0x69d   : > { %v1044_v31 = vadd.f32 %v1035_v29, %v2143_v62  ;;  %v1038_v32 = vpop.f32.mrb[14].mxu0 }
 0x69e   : > { %v1649_v33 = vmul.f32 -1.442695, %v1043_v30  ;;  %v1040_v38 = vpop.f32.mrb[15].mxu0  ;;  %v1039_v41 = vadd.f32 %v1038_v32, %v960_v40 }
 0x69f   : > { %v1650_v39 = vmul.f32 -1.442695, %v1044_v31  ;;  %v1041_v42 = vadd.f32 %v1040_v38, %v960_v40 }
 0x6a0   : > { %1845 = vpow2.f32 %v1649_v33  ;;  %v1045_v0 = vadd.f32 %v1039_v41, %v2145_v6 }
 0x6a1   : > { %1847 = vpow2.f32 %v1650_v39  ;;  %v1046_v43 = vadd.f32 %v1041_v42, %v2147_v10 }
 0x6a2   : > { %1849 = vtanh.f32 %v1045_v0 }
 0x6a3   : > { %1851 = vtanh.f32 %v1046_v43 }
 0x6aa   : > { %v1846_v44 = vpop.eup %1845 }
 0x6ab   : > { %v1848_v45 = vpop.eup %1847  ;;  %v1053_v46 = vadd.f32 1.0, %v1846_v44 }
 0x6ac   : > { %v1054_v49 = vadd.f32 1.0, %v1848_v45  ;;  %v1850_v50 = vpop.eup %1849 }
 0x6ad   : > { %1853 = vrcp.f32 %v1053_v46  ;;  %v1852_v51 = vpop.eup %1851 }
 0x6ae   : > { %1855 = vrcp.f32 %v1054_v49 }
 0x6b7   : > { %v1854_v52 = vpop.eup %1853 }
 0x6b8   : > { %v1856_v47 = vpop.eup %1855  ;;  %v1061_v55 = vmul.f32 %v1854_v52, %v1850_v50  ;;  %v1474_v52 = vld [vmem:[%s2392_s2 + $0xc0] sm:$0x1] }
 0x6b9   : > { %v1062_v56 = vmul.f32 %v1856_v47, %v1852_v51 }
 0x6bb   : > { %1077 = vmatprep.subr.mxu1 %v1062_v56 }
 0x6bc   : > { %1078 = vmatpush1.msra.mxu1 %v1061_v55 }
 0x6bd   : > { %1651 = vmatmul.mubr.msk.f32.vlgmr.msra.gmra.mrb[10].mxu1 %vm592_vm8, %v925_v23 }
 0x6be   : > { %1147 = vmatprep.mubr.f32.mxu1 %v1936_v7 }
 0x6c1   : > { %1652 = vmatmul.mubr.msk.f32.gmra.mrb[6].mxu1 %vm592_vm8, %v926_v61 }
 0x6c2   : > { %1377 = vmatprep.mubr.f32.mxu1 %v1936_v7 }
 0x790   : > { %v1143_v35 = vpop.f32.mrb[10].mxu1 }
 0x791   : > { %v1144_v36 = vadd.f32 %v1143_v35, %v1066_v34  ;;  %v1145_v58 = vpop.f32.mrb[11].mxu1 }
 0x792   : > { %v1146_v59 = vadd.f32 %v1145_v58, %v1066_v34 }
 0x793   : > { %v1154_v63 = vadd.f32 %v1144_v36, %v2224_v37  ;;  %v1161_v37 = vld [vmem:[%s2392_s2 + $0x70] sm:$0xff] }
 0x794   : > { %v1155_v53 = vadd.f32 %v1146_v59, %v2226_v57 }
 0x795   : > { %v1156_v1 = vmul.f32 0.70710677, %v1154_v63 }
 0x796   : > { %v1157_v5 = vmul.f32 0.70710677, %v1155_v53 }
 0x797   : > { %v1171_v12 = vadd.f32 %v1169_v54, %v1156_v1 }
 0x798   : > { %v1172_v13 = vadd.f32 %v1169_v54, %v1157_v5 }
 0x799   : > { %1181 = vrot.lane.b32.xlu1 %v1171_v12, %s1943_s11 }
 0x79a   : > { %v1795_v14 = vpack.i.bf16 %v1172_v13, %v1171_v12 }
 0x79c   : > { %1796 = vrot.lane.b32.xlu0 %v1795_v14, %s1944_s20  ;;  %s2348_s20 = scalar_lea.hbm %s2393_s3, %s1670_s30 }
 0x79d   : > { %1191 = vperm.xlu1 %1800, %v1160_v16  }
 0x7a0   : > { %1183 = vrot.lane.b32.xlu0 %v1172_v13, %s1943_s11 }
 0x7a1   : > { %1801 = vset.pattern.permute.xlu1 %v1942_v48 }
 0x7a2   : > { %589 = vperm.xlu1 %1801, %v2205_v15  }
 0x7a4   : > { %1196 = vperm.xlu0 %1792, %v1161_v37  }
 0x7a6   : > { %1070 = vperm.xlu1 %1801, %v926_v61  }
 0x7a8   : > { %1802 = vset.pattern.permute.xlu0 %v1942_v48 }
 0x7a9   : > { %833 = vperm.xlu0 %1802, %v2259_v17  }
 0x7aa   : > { %1306 = vperm.xlu1 %1801, %v1163_v4  }
 0x7ad   : > { %1395 = vperm.xlu0 %1802, %v2318_v11  }
 0x7ae   : > { %1803 = vset.pattern.permute.xlu1 %v1934_v2 }
 0x7b1   : > { %1804 = vset.pattern.permute.xlu0 %v1935_v3 }
 0x7b2   : > { %1496 = vperm.xlu0 %1804, %v1474_v52  }
 0x80b   : > { %v1182_v25 = vpop.permute.xlu1 %1181 }
 0x80e   : > { %v1797_v57 = vpop.permute.xlu0 %1796 }
 0x80f   : > { %v1799_v18 = vunpack.i.h.bf16 %v1797_v57  ;;  %v1798_v19 = vunpack.i.l.bf16 %v1797_v57 }
 0x811   : > { %v1178_v20 = vsel %vm699_vm9, %v1799_v18, %v1798_v19  ;;  %v1177_v21 = vsel %vm699_vm9, %v1798_v19, %v1799_v18 }
 0x812   : > { %v1692_v22 = vpack.c.bf16 %v1171_v12, %v1178_v20  ;;  %v1184_v23 = vpop.permute.xlu0 %1183  ;;  %v1690_v24 = vpack.c.bf16 %v1172_v13, %v1177_v21 }
 0x813   : > { %v1186_v15 = vsel %vm710_vm12, %v1184_v23, %v1182_v25  ;;  %v1185_v48 = vsel %vm710_vm12, %v1182_v25, %v1184_v23 }
 0x814   : > { %1691 = vmatprep.subr.bf16.mxu0 %v1690_v24 }
 0x815   : > { %1694 = vmatpush1.bf16.msk.msra.mxu0 %vm2184_vm11, %v1692_v22 }
 0x816   : > { %1655 = vmatprep.subr.msk.mxu0 %vm705_vm13, %v1186_v15 }
 0x819   : > { %1208 = vmatpush1.msra.mxu0 %v1185_v48 }
 0x81a   : > { %1656 = vmatmul.mubr.msk.f32.vlgmr.msra.gmra.mrb[16].mxu0 %vm480_vm7, %v1160_v16 }
 0x81b   : > { %1273 = vmatprep.mubr.f32.mxu0 %v1936_v7 }
 0x81c   : > { %v1192_v17 = vpop.permute.xlu1 %1191 }
 0x81e   : > { %1657 = vmatmul.mubr.msk.f32.gmra.mrb[18].mxu0 %vm480_vm7, %v1161_v37 }
 0x81f   : > { %1464 = vmatprep.mubr.f32.mxu0 %v1936_v7 }
 0x821   : > { %v590_v47 = vpop.permute.xlu1 %589 }
 0x823   : > { %v1197_v40 = vpop.permute.xlu0 %1196 }
 0x825   : > { %v1071_v56 = vpop.permute.xlu1 %1070 }
 0x828   : > { %v834_v55 = vpop.permute.xlu0 %833 }
 0x829   : > { %v1695_v34 = vadd.f32 %v834_v55, %v590_v47  ;;  %v1307_v36 = vpop.permute.xlu1 %1306 }
 0x82b   : > { %v1696_v35 = vadd.f32 %v1695_v34, %v1071_v56 }
 0x82c   : > { %v1396_v13 = vpop.permute.xlu0 %1395 }
 0x82d   : > { %v1697_v59 = vadd.f32 %v1696_v35, %v1307_v36 }
 0x8ed   : > { %v1269_v26 = vpop.f32.mrb[16].mxu0 }
 0x8ee   : > { %v1270_v27 = vadd.f32 %v1269_v26, %v1192_v17  ;;  %v1271_v28 = vpop.f32.mrb[17].mxu0 }
 0x8ef   : > { %v1272_v29 = vadd.f32 %v1271_v28, %v1192_v17 }
 0x8f0   : > { %v1280_v30 = vadd.f32 %v1270_v27, %v2141_v60 }
 0x8f1   : > { %v1281_v31 = vadd.f32 %v1272_v29, %v2143_v62  ;;  %v1275_v32 = vpop.f32.mrb[18].mxu0  ;;  %v1497_v29 = vpop.permute.xlu0 %1496 }
 0x8f2   : > { %v1658_v33 = vmul.f32 -1.442695, %v1280_v30  ;;  %v1277_v38 = vpop.f32.mrb[19].mxu0  ;;  %v1276_v41 = vadd.f32 %v1275_v32, %v1197_v40 }
 0x8f3   : > { %v1659_v39 = vmul.f32 -1.442695, %v1281_v31  ;;  %v1278_v2 = vadd.f32 %v1277_v38, %v1197_v40 }
 0x8f4   : > { %1857 = vpow2.f32 %v1658_v33  ;;  %v1282_v3 = vadd.f32 %v1276_v41, %v2145_v6  ;;  %v1162_v6 = vld [vmem:[%s2392_s2 + $0xa8] sm:$0xff] }
 0x8f5   : > { %1859 = vpow2.f32 %v1659_v39  ;;  %v1283_v42 = vadd.f32 %v1278_v2, %v2147_v10  ;;  %v1473_v10 = vld [vmem:[%s2392_s2 + $0xc0] sm:$0xff] }
 0x8f6   : > { %1861 = vtanh.f32 %v1282_v3  ;;  %1477 = vperm.xlu1 %1803, %v1473_v10  }
 0x8f7   : > { %1863 = vtanh.f32 %v1283_v42 }
 0x8fe   : > { %v1858_v0 = vpop.eup %1857 }
 0x8ff   : > { %v1860_v43 = vpop.eup %1859  ;;  %v1290_v44 = vadd.f32 1.0, %v1858_v0 }
 0x900   : > { %v1291_v60 = vadd.f32 1.0, %v1860_v43  ;;  %v1862_v62 = vpop.eup %1861 }
 0x901   : > { %1865 = vrcp.f32 %v1290_v44  ;;  %v1864_v45 = vpop.eup %1863 }
 0x902   : > { %1867 = vrcp.f32 %v1291_v60 }
 0x90b   : > { %v1866_v46 = vpop.eup %1865 }
 0x90c   : > { %v1868_v49 = vpop.eup %1867  ;;  %v1298_v50 = vmul.f32 %v1866_v46, %v1862_v62 }
 0x90d   : > { %v1299_v51 = vmul.f32 %v1868_v49, %v1864_v45 }
 0x90f   : > { %1313 = vmatprep.subr.mxu1 %v1299_v51 }
 0x910   : > { %1314 = vmatpush1.msra.mxu1 %v1298_v50 }
 0x911   : > { %1660 = vmatmul.mubr.msk.f32.vlgmr.msra.gmra.mrb[12].mxu1 %vm592_vm8, %v1162_v6 }
 0x912   : > { %1381 = vmatprep.mubr.f32.mxu1 %v1936_v7 }
 0x915   : > { %1661 = vmatmul.mubr.msk.f32.gmra.mrb[6].mxu1 %vm592_vm8, %v1163_v4  ;;  %v1945_v4 = vmov 1966171168  }
 0x975   : > { %v1478_v18 = vpop.permute.xlu1 %1477 }
 0x9e4   : > { %v1379_v58 = vpop.f32.mrb[12].mxu1 }
 0x9e5   : > { %v1380_v7 = vpop.f32.mrb[13].mxu1 }
 0x9e8   : > { %v1383_v63 = vpop.f32.mrb[6].mxu1 }
 0x9e9   : > { %v1698_v53 = vadd.f32 %v1697_v59, %v1383_v63  ;;  %v1385_v54 = vpop.f32.mrb[7].mxu1 }
 0x9ea   : > { %v1702_v1 = vadd.f32 %v1697_v59, %v1385_v54 }
 0x9eb   : > { %v1391_v12 = vmul.f32 0.5, %v1698_v53 }
 0x9ec   : > { %v1392_v5 = vmul.f32 0.5, %v1702_v1 }
 0x9ee   : > { %1400 = vmatprep.subr.mxu0 %v1392_v5 }
 0x9ef   : > { %1401 = vmatpush1.msra.mxu0 %v1391_v12 }
 0x9f0   : > { %1662 = vmatmul.mubr.msk.f32.vlgmr.msra.gmra.mrb[20].mxu0 %vm592_vm8, %v2318_v11  ;;  %v1505_v11 = vunpack.c.l.s4 %v1945_v4 }
 0x9f2   : > { %v1506_v28 = vunpack.c.0.s8 %v1505_v11 }
 0x9f4   : > { %v1509_v38 = vsub.s32 %v1506_v28, %v2040_v9 }
 0xac3   : > { %v1466_v14 = vpop.f32.mrb[20].mxu0 }
 0xac4   : > { %v1467_v16 = vadd.f32 %v1466_v14, %v1396_v13  ;;  %v1468_v37 = vpop.f32.mrb[21].mxu0 }
 0xac5   : > { %v1469_v57 = vadd.f32 %v1468_v37, %v1396_v13 }
 0xac6   : > { %v1471_v19 = vmax.f32 %v1467_v16, 0.0 }
 0xac7   : > { %v1472_v20 = vmax.f32 %v1469_v57, 0.0 }
 0xac8   : > { %v1480_v21 = vmul.f32 %v1478_v18, %v1471_v19 }
 0xac9   : > { %v1481_v22 = vmul.f32 %v1478_v18, %v1472_v20 }
 0xaca   : > { %v1482_v23 = vrot.slane %v1480_v21, 4 }
 0xacb   : > { %v1488_v24 = vrot.slane %v1481_v22, 4 }
 0xacc   : > { %v1483_v25 = vadd.f32 %v1482_v23, %v1480_v21 }
 0xacd   : > { %v1489_v15 = vadd.f32 %v1488_v24, %v1481_v22 }
 0xace   : > { %v1484_v48 = vrot.slane %v1483_v25, 2 }
 0xacf   : > { %v1490_v61 = vrot.slane %v1489_v15, 2 }
 0xad0   : > { %v1485_v17 = vadd.f32 %v1484_v48, %v1483_v25 }
 0xad1   : > { %v1491_v26 = vadd.f32 %v1490_v61, %v1489_v15 }
 0xad2   : > { %v1486_v27 = vrot.slane %v1485_v17, 1 }
 0xad3   : > { %v1492_v30 = vrot.slane %v1491_v26, 1 }
 0xad4   : > { %v1487_v31 = vadd.f32 %v1486_v27, %v1485_v17 }
 0xad5   : > { %v1493_v32 = vadd.f32 %v1492_v30, %v1491_v26 }
 0xad6   : > { %v1499_v33 = vadd.f32 %v1497_v29, %v1487_v31 }
 0xad7   : > { %v1500_v39 = vadd.f32 %v1497_v29, %v1493_v32 }
 0xad9   : > { %v1503_v40 = vcombine.low %v1499_v33, %v1500_v39 }
 0xadb   : > { %v1510_v41 = vrot.slane %v1503_v40, %v1509_v38 }
 0xadd   : > { %v1517_v2 = vrot.slane %v1510_v41, %v1509_v38 }
 0xadf   : > { %1523 = vst.msk [vmem:[%s178_s25] sm:$0x3] %vm1521_vm14, %v1517_v2 }
 0xae0   : > { %1882 = shalt.err (!%p1879_p3)
}
 0xae1   : > { %s1883_s6 = scalar_lea.hbm %s2348_s20, 32  ;;  %s1887_s9 = scalar_lea.hbm %s2393_s3, 64 }
 0xae2   : > { %p1884_p4 = scmp.ne.s32.totalorder %s2348_s20, %s1883_s6  ;;  %p1888_p9 = scmp.lt.u32.totalorder %s2348_s20, %s2393_s3 }
 0xae3   : > { %p1889_p10 = scmp.lt.u32.totalorder %s1887_s9, %s1883_s6  ;;  %p1891_p12 = scmp.lt.u32.totalorder %s1883_s6, %s2348_s20 }
 0xae4   : > { %p1885_p7 = pnand %p1884_p4, %p2005_p5 }
 0xae5   : > { %p1890_p11 = por %p1889_p10, %p1888_p9 }
 0xae6   : > { %p1886_p8 = pneg %p1885_p7 }
 0xae7   : > { %p1892_p13 = por %p1891_p12, %p1890_p11 }
 0xae9   : > { %p1893_p0 = pnand %p1892_p13, %p1886_p8 }
 0xaeb   : > { %1896 = shalt.err (!%p1893_p0)
}
 0xaec   : > { %1709 = dma.vmem_to_hbm [thread:$0]  (%p2005_p5), %s2350_s26, 32, %s2348_s20, %s1525_s28  }
 0xaed PF: > { %p1715_p1 = scmp.ge.s32.totalorder %s1931_s15, 2  ;;  %s1551_s10 = sand.u32 1, %s1919_s12  }
 0xaee   : > { %s1552_s24 = scalar_lea.sflag [#allocation3], %s1551_s10 }
 0xaef   : > { %p1712_p2 = pnand %p1715_p1, %p2009_p6 }
 0xaf1   : > { %1914 = dma.done.wait (!%p1712_p2), %s1552_s24, 32  }
 0xaf2   : > { %1916 = vsyncadd (!%p1712_p2), %s1552_s24, 4294967264  ;;  %p13_p3 = scmp.ge.s32.totalorder %s1992_s18, 4   ;;  %s2400_s12 = smov %s1923_s13 }
 0xaf3   : > { %s2401_s13 = smov %s1927_s14  ;;  %s2402_s14 = smov %s2003_s21 }
 0xaf4   : > { %s2403_s15 = smov %s1992_s18  ;;  %15 = sbr.rel (!%p13_p3) target bundleno = 3 (0x3), region = 73 }
 0xafb   :  { %1557 = vsyncpa [#allocation3], 1 }
 0xafc   :  { %1559 = vsyncpa [#allocation3 + $0x1], 1 }

</bundles_post_ra>
